<compile_context>
chip_gen: v7x
topology: tpu7x:2x2x1
jax: 0.10.0
libtpu: 0.0.40
codegen_flags: <defaults>
</compile_context>

<pallas_src>
import functools
import math

import jax
import jax.numpy as jnp
from jax import lax
from jax.experimental import pallas as pl
from jax.experimental.pallas import tpu as pltpu


def _layer_norm(x, gamma, beta, eps=1e-5):
    # LayerNorm subclass always computes in float32 (x is already f32 here).
    mu = jnp.mean(x, axis=-1, keepdims=True)
    var = jnp.mean((x - mu) ** 2, axis=-1, keepdims=True)
    return (x - mu) * lax.rsqrt(var + eps) * gamma + beta


def _resblock_kernel(x_ref,
                     ln1_g, ln1_b, wq, bq, wk, bk, wv, bv, wo, bo,
                     ln2_g, ln2_b, wfc, bfc, wpr, bpr,
                     o_ref, *, n_head):
    """One ResidualAttentionBlock for one batch element / one query tile."""
    seq_len = x_ref.shape[1]
    d_model = x_ref.shape[2]
    tile_l = o_ref.shape[1]
    dh = d_model // n_head

    x_full = x_ref[0].astype(jnp.float32)                      # (L, D) f32
    h_full_f32 = _layer_norm(x_full, ln1_g[0], ln1_b[0])        # (L, D) f32

    if tile_l == seq_len:
        # Single query tile: reuse the full-sequence LN.
        x_q = x_full
        h_q_f32 = h_full_f32
    else:
        row0 = pl.multiple_of(pl.program_id(1) * tile_l, tile_l)
        x_q = x_ref[0, pl.ds(row0, tile_l), :].astype(jnp.float32)
        h_q_f32 = _layer_norm(x_q, ln1_g[0], ln1_b[0])

    h_full = h_full_f32.astype(jnp.bfloat16)
    h_q = h_q_f32.astype(jnp.bfloat16)

    # ---- attention ---------------------------------------------------------
    # QKV projections in bf16 on the MXU, f32 accumulation.
    # The 1/sqrt(dh) scale is already folded into wq / bq at init time.
    q = (jnp.dot(h_q, wq[...], preferred_element_type=jnp.float32)
         + bq[0]).astype(jnp.bfloat16)                          # (TL, D)
    k = (jnp.dot(h_full, wk[...], preferred_element_type=jnp.float32)
         + bk[0]).astype(jnp.bfloat16)                          # (L, D)
    v = (jnp.dot(h_full, wv[...], preferred_element_type=jnp.float32)
         + bv[0]).astype(jnp.bfloat16)                          # (L, D)

    # Per-head attention; each head's context is folded straight into the
    # output projection (no lane-dim concatenate of head outputs).
    attn = jnp.zeros((tile_l, d_model), jnp.float32)
    for hd in range(n_head):                                    # static unroll
        cs = slice(hd * dh, (hd + 1) * dh)
        s = lax.dot_general(q[:, cs], k[:, cs],
                            (((1,), (1,)), ((), ())),           # contract dh
                            preferred_element_type=jnp.float32)  # (TL, L)
        s = s - jnp.max(s, axis=-1, keepdims=True)
        p = jnp.exp(s)                                          # f32 softmax
        p = p * pl.reciprocal(jnp.sum(p, axis=-1, keepdims=True), approx=True)
        ctx = jnp.dot(p.astype(jnp.bfloat16), v[:, cs],
                      preferred_element_type=jnp.float32)       # (TL, dh)
        attn = attn + jnp.dot(ctx.astype(jnp.bfloat16), wo[hd],
                              preferred_element_type=jnp.float32)  # (TL, D)

    x1 = x_q + attn + bo[0]                                     # residual, f32

    # ---- MLP ---------------------------------------------------------------
    h2 = _layer_norm(x1, ln2_g[0], ln2_b[0]).astype(jnp.bfloat16)
    u = jnp.dot(h2, wfc[...], preferred_element_type=jnp.float32) + bfc[0]
    u = u * jax.nn.sigmoid(1.702 * u)                           # QuickGELU f32
    m = jnp.dot(u.astype(jnp.bfloat16), wpr[...],
                preferred_element_type=jnp.float32) + bpr[0]
    o_ref[0] = (x1 + m).astype(o_ref.dtype)


_WEIGHT_ORDER = ("ln1_g", "ln1_b", "wq_t", "bq", "wk_t", "bk", "wv_t", "bv",
                 "wo_t", "bo", "ln2_g", "ln2_b", "wfc_t", "bfc", "wpr_t", "bpr")


def _const_spec(shape, single_buffer):
    """Grid-invariant (weight) BlockSpec; single-buffered when supported."""
    nd = len(shape)
    index_map = lambda b, t, _nd=nd: (0,) * _nd
    if single_buffer:
        # Weights never change across the grid: one VMEM buffer is enough,
        # halving the resident weight footprint vs. default double-buffering.
        return pl.BlockSpec(shape, index_map, pipeline_mode=pl.Buffered(1))
    return pl.BlockSpec(shape, index_map)


def _build_resblock_call(n, seq_len, d_model, n_head, tile_l, x_dtype,
                         weights, single_buffer):
    kernel = functools.partial(_resblock_kernel, n_head=n_head)
    num_tiles = seq_len // tile_l

    # Explicit scoped-VMEM budget sized from the actual residency.
    w_bytes = sum(int(w.size) * w.dtype.itemsize for w in weights)
    act_bytes = 4 * (3 * seq_len * d_model            # x_full / LN / K,V
                     + 10 * tile_l * d_model          # q / attn / residuals
                     + 2 * tile_l * seq_len           # scores / probs
                     + 5 * tile_l * 4 * d_model)      # MLP hidden
    est = ((1 if single_buffer else 2) * w_bytes
           + 2 * 4 * seq_len * d_model + act_bytes)
    vmem_limit = int(min(56 * 1024 * 1024, max(16 * 1024 * 1024, 2 * est)))

    return pl.pallas_call(
        kernel,
        out_shape=jax.ShapeDtypeStruct((n, seq_len, d_model), x_dtype),
        grid_spec=pltpu.PrefetchScalarGridSpec(
            num_scalar_prefetch=0,
            grid=(n, num_tiles),
            in_specs=[pl.BlockSpec((1, seq_len, d_model),
                                   lambda b, t: (b, 0, 0))]
                     + [_const_spec(w.shape, single_buffer) for w in weights],
            out_specs=pl.BlockSpec((1, tile_l, d_model),
                                   lambda b, t: (b, t, 0)),
        ),
        compiler_params=pltpu.CompilerParams(
            dimension_semantics=("parallel", "parallel"),
            vmem_limit_bytes=vmem_limit),
    )


_SINGLE_BUFFER_WEIGHTS_OK = None  # cached capability probe for pl.Buffered(1)


def resblock_forward(x_nld, params, *, d_model, n_head):
    """x_nld: (N, L, D).  Applies one ResidualAttentionBlock."""
    global _SINGLE_BUFFER_WEIGHTS_OK
    n, seq_len, d = x_nld.shape
    assert d == d_model and d_model % n_head == 0

    # Tile the query/sequence axis when it is large (parallel grid axis:
    # better DMA/compute overlap and feeds both v7x TensorCores).
    tile_l = 128 if (seq_len > 128 and seq_len % 128 == 0) else seq_len
    # Note: for non-(8,128)-aligned real shapes (e.g. L=197), pad L/D in the
    # wrapper and mask padded keys in the softmax; not needed for these shapes.

    weights = [params[k] for k in _WEIGHT_ORDER]

    def call(single_buffer):
        fn = _build_resblock_call(n, seq_len, d_model, n_head, tile_l,
                                  x_nld.dtype, weights, single_buffer)
        return fn(x_nld, *weights)

    if _SINGLE_BUFFER_WEIGHTS_OK is None:
        try:
            out = call(True)
            _SINGLE_BUFFER_WEIGHTS_OK = True
            return out
        except Exception:
            # Fallback for jax versions where pl.Buffered(1) is not supported
            # on the main pallas_call pipeline: default (double-buffered) specs.
            _SINGLE_BUFFER_WEIGHTS_OK = False
    return call(_SINGLE_BUFFER_WEIGHTS_OK)


def transformer_forward(x_lnd, layer_params, *, d_model, n_head):
    """x_lnd: (L, N, D) exactly like the PyTorch module. Returns (L, N, D)."""
    x = jnp.transpose(x_lnd, (1, 0, 2))          # (N, L, D) for the kernel
    # Note: next-layer weight prefetch across pallas_calls (cross-call DMA /
    # semaphore futures) would hide weight HBM traffic; not implemented here.
    for params in layer_params:
        x = resblock_forward(x, params, d_model=d_model, n_head=n_head)
    return jnp.transpose(x, (1, 0, 2))           # back to (L, N, D)


def init_block_params(key, d_model, n_head):
    """Deterministic synthetic weights (shapes match the PyTorch block).

    Linear weights are stored pre-transposed (in_dim, out_dim) in bf16 so the
    kernel computes y = x @ W_t + b on the MXU with f32 accumulation.  The
    1/sqrt(dh) attention scale is folded into the Q projection, and the output
    projection is stored per-head (n_head, dh, d_model).
    """
    k0, k1, k2, k3 = jax.random.split(key, 4)
    s = 0.02
    f32, bf16 = jnp.float32, jnp.bfloat16
    dh = d_model // n_head
    scale = 1.0 / math.sqrt(dh)

    wqkv_t = jax.random.normal(k0, (d_model, 3 * d_model), f32) * s
    wq_t = wqkv_t[:, :d_model] * scale                   # fold 1/sqrt(dh)
    wk_t = wqkv_t[:, d_model:2 * d_model]
    wv_t = wqkv_t[:, 2 * d_model:]
    bqkv = jnp.zeros((3 * d_model,), f32)
    bq = (bqkv[:d_model] * scale).reshape(1, d_model)    # fold 1/sqrt(dh)
    bk = bqkv[d_model:2 * d_model].reshape(1, d_model)
    bv = bqkv[2 * d_model:].reshape(1, d_model)

    wo_t = jax.random.normal(k1, (d_model, d_model), f32) * s
    wfc_t = jax.random.normal(k2, (d_model, 4 * d_model), f32) * s
    wpr_t = jax.random.normal(k3, (4 * d_model, d_model), f32) * s

    return dict(
        ln1_g=jnp.ones((1, d_model), f32),
        ln1_b=jnp.zeros((1, d_model), f32),
        wq_t=wq_t.astype(bf16), bq=bq,
        wk_t=wk_t.astype(bf16), bk=bk,
        wv_t=wv_t.astype(bf16), bv=bv,
        wo_t=wo_t.reshape(n_head, dh, d_model).astype(bf16),
        bo=jnp.zeros((1, d_model), f32),
        ln2_g=jnp.ones((1, d_model), f32),
        ln2_b=jnp.zeros((1, d_model), f32),
        wfc_t=wfc_t.astype(bf16), bfc=jnp.zeros((1, 4 * d_model), f32),
        wpr_t=wpr_t.astype(bf16), bpr=jnp.zeros((1, d_model), f32),
    )


if __name__ == "__main__":
    # Transformer(width=32, layers=2, heads=4), input (seq=8, batch=2, width=32)
    WIDTH, LAYERS, HEADS = 32, 2, 4
    SEQ, BATCH = 8, 2

    root = jax.random.PRNGKey(0)
    kx, *kws = jax.random.split(root, 1 + LAYERS)
    x = jax.random.normal(kx, (SEQ, BATCH, WIDTH), jnp.float32)
    layer_params = [init_block_params(k, WIDTH, HEADS) for k in kws]

    out = transformer_forward(x, layer_params, d_model=WIDTH, n_head=HEADS)
    out = jax.block_until_ready(out)
    assert out.shape == (SEQ, BATCH, WIDTH) and out.dtype == jnp.float32
    print("KERNEL_OK")
</pallas_src>

<mosaic_0001>
module attributes {stable_mosaic.version = 11 : i64} {
  func.func @_resblock_kernel(%arg0: i32, %arg1: i32, %arg2: memref<1x8x32xf32, #tpu.memory_space<vmem>>, %arg3: memref<1x32xf32, #tpu.memory_space<vmem>>, %arg4: memref<1x32xf32, #tpu.memory_space<vmem>>, %arg5: memref<32x32xbf16, #tpu.memory_space<vmem>>, %arg6: memref<1x32xf32, #tpu.memory_space<vmem>>, %arg7: memref<32x32xbf16, #tpu.memory_space<vmem>>, %arg8: memref<1x32xf32, #tpu.memory_space<vmem>>, %arg9: memref<32x32xbf16, #tpu.memory_space<vmem>>, %arg10: memref<1x32xf32, #tpu.memory_space<vmem>>, %arg11: memref<4x8x32xbf16, #tpu.memory_space<vmem>>, %arg12: memref<1x32xf32, #tpu.memory_space<vmem>>, %arg13: memref<1x32xf32, #tpu.memory_space<vmem>>, %arg14: memref<1x32xf32, #tpu.memory_space<vmem>>, %arg15: memref<32x128xbf16, #tpu.memory_space<vmem>>, %arg16: memref<1x128xf32, #tpu.memory_space<vmem>>, %arg17: memref<128x32xbf16, #tpu.memory_space<vmem>>, %arg18: memref<1x32xf32, #tpu.memory_space<vmem>>, %arg19: memref<1x8x32xf32, #tpu.memory_space<vmem>>) attributes {dimension_semantics = [#tpu.dimension_semantics<parallel>, #tpu.dimension_semantics<parallel>], iteration_bounds = array<i64: 2, 1>, scalar_prefetch = 0 : i64, scratch_operands = 0 : i64, tpu.core_type = #tpu.core_type<tc>, window_params = [{transform_indices = @transform_0, window_bounds = array<i64: 1, 8, 32>}, {pipeline_mode = #tpu.pipeline_mode<synchronous>, transform_indices = @transform_1, window_bounds = array<i64: 1, 32>}, {pipeline_mode = #tpu.pipeline_mode<synchronous>, transform_indices = @transform_2, window_bounds = array<i64: 1, 32>}, {pipeline_mode = #tpu.pipeline_mode<synchronous>, transform_indices = @transform_3, window_bounds = array<i64: 32, 32>}, {pipeline_mode = #tpu.pipeline_mode<synchronous>, transform_indices = @transform_4, window_bounds = array<i64: 1, 32>}, {pipeline_mode = #tpu.pipeline_mode<synchronous>, transform_indices = @transform_5, window_bounds = array<i64: 32, 32>}, {pipeline_mode = #tpu.pipeline_mode<synchronous>, transform_indices = @transform_6, window_bounds = array<i64: 1, 32>}, {pipeline_mode = #tpu.pipeline_mode<synchronous>, transform_indices = @transform_7, window_bounds = array<i64: 32, 32>}, {pipeline_mode = #tpu.pipeline_mode<synchronous>, transform_indices = @transform_8, window_bounds = array<i64: 1, 32>}, {pipeline_mode = #tpu.pipeline_mode<synchronous>, transform_indices = @transform_9, window_bounds = array<i64: 4, 8, 32>}, {pipeline_mode = #tpu.pipeline_mode<synchronous>, transform_indices = @transform_10, window_bounds = array<i64: 1, 32>}, {pipeline_mode = #tpu.pipeline_mode<synchronous>, transform_indices = @transform_11, window_bounds = array<i64: 1, 32>}, {pipeline_mode = #tpu.pipeline_mode<synchronous>, transform_indices = @transform_12, window_bounds = array<i64: 1, 32>}, {pipeline_mode = #tpu.pipeline_mode<synchronous>, transform_indices = @transform_13, window_bounds = array<i64: 32, 128>}, {pipeline_mode = #tpu.pipeline_mode<synchronous>, transform_indices = @transform_14, window_bounds = array<i64: 1, 128>}, {pipeline_mode = #tpu.pipeline_mode<synchronous>, transform_indices = @transform_15, window_bounds = array<i64: 128, 32>}, {pipeline_mode = #tpu.pipeline_mode<synchronous>, transform_indices = @transform_16, window_bounds = array<i64: 1, 32>}, {transform_indices = @transform_17, window_bounds = array<i64: 1, 8, 32>}]} {
    %c0 = arith.constant 0 : index
    %c0_0 = arith.constant 0 : index
    %c0_1 = arith.constant 0 : index
    %0 = vector.load %arg2[%c0, %c0_0, %c0_1] : memref<1x8x32xf32, #tpu.memory_space<vmem>>, vector<1x8x32xf32>
    %1 = vector.shape_cast %0 : vector<1x8x32xf32> to vector<8x32xf32>
    %c0_2 = arith.constant 0 : index
    %c0_3 = arith.constant 0 : index
    %2 = vector.load %arg3[%c0_2, %c0_3] : memref<1x32xf32, #tpu.memory_space<vmem>>, vector<1x32xf32>
    %3 = vector.shape_cast %2 : vector<1x32xf32> to vector<32xf32>
    %c0_4 = arith.constant 0 : index
    %c0_5 = arith.constant 0 : index
    %4 = vector.load %arg4[%c0_4, %c0_5] : memref<1x32xf32, #tpu.memory_space<vmem>>, vector<1x32xf32>
    %5 = vector.shape_cast %4 : vector<1x32xf32> to vector<32xf32>
    %cst = arith.constant dense<0.000000e+00> : vector<8xf32>
    %6 = vector.multi_reduction <add>, %1, %cst [1] : vector<8x32xf32> to vector<8xf32>
    %7 = vector.shape_cast %6 : vector<8xf32> to vector<8x1xf32>
    %cst_6 = arith.constant 3.200000e+01 : f32
    %8 = vector.broadcast %cst_6 : f32 to vector<8x1xf32>
    %9 = arith.divf %7, %8 : vector<8x1xf32>
    %10 = vector.broadcast %9 : vector<8x1xf32> to vector<8x32xf32>
    %11 = arith.subf %1, %10 : vector<8x32xf32>
    %12 = arith.mulf %11, %11 : vector<8x32xf32>
    %cst_7 = arith.constant dense<0.000000e+00> : vector<8xf32>
    %13 = vector.multi_reduction <add>, %12, %cst_7 [1] : vector<8x32xf32> to vector<8xf32>
    %14 = vector.shape_cast %13 : vector<8xf32> to vector<8x1xf32>
    %cst_8 = arith.constant 3.200000e+01 : f32
    %15 = vector.broadcast %cst_8 : f32 to vector<8x1xf32>
    %16 = arith.divf %14, %15 : vector<8x1xf32>
    %17 = vector.broadcast %9 : vector<8x1xf32> to vector<8x32xf32>
    %18 = arith.subf %1, %17 : vector<8x32xf32>
    %cst_9 = arith.constant 9.99999974E-6 : f32
    %19 = vector.broadcast %cst_9 : f32 to vector<8x1xf32>
    %20 = arith.addf %16, %19 : vector<8x1xf32>
    %21 = math.rsqrt %20 : vector<8x1xf32>
    %22 = vector.broadcast %21 : vector<8x1xf32> to vector<8x32xf32>
    %23 = arith.mulf %18, %22 : vector<8x32xf32>
    %24 = vector.shape_cast %3 : vector<32xf32> to vector<1x32xf32>
    %25 = vector.broadcast %24 : vector<1x32xf32> to vector<8x32xf32>
    %26 = arith.mulf %23, %25 : vector<8x32xf32>
    %27 = vector.shape_cast %5 : vector<32xf32> to vector<1x32xf32>
    %28 = vector.broadcast %27 : vector<1x32xf32> to vector<8x32xf32>
    %29 = arith.addf %26, %28 : vector<8x32xf32>
    %30 = arith.truncf %29 : vector<8x32xf32> to vector<8x32xbf16>
    %31 = arith.truncf %29 : vector<8x32xf32> to vector<8x32xbf16>
    %c0_10 = arith.constant 0 : index
    %c0_11 = arith.constant 0 : index
    %32 = vector.load %arg5[%c0_10, %c0_11] : memref<32x32xbf16, #tpu.memory_space<vmem>>, vector<32x32xbf16>
    %cst_12 = arith.constant dense<0.000000e+00> : vector<8x32xf32>
    %33 = tpu.matmul %31, %32, %cst_12 {dimension_numbers = #tpu.dot_dimension_numbers<[1], [0], [0], [1], [0, 0, 1, 1], [], []>} : vector<8x32xbf16>, vector<32x32xbf16>, vector<8x32xf32> -> vector<8x32xf32>
    %c0_13 = arith.constant 0 : index
    %c0_14 = arith.constant 0 : index
    %34 = vector.load %arg6[%c0_13, %c0_14] : memref<1x32xf32, #tpu.memory_space<vmem>>, vector<1x32xf32>
    %35 = vector.shape_cast %34 : vector<1x32xf32> to vector<32xf32>
    %36 = vector.shape_cast %35 : vector<32xf32> to vector<1x32xf32>
    %37 = vector.broadcast %36 : vector<1x32xf32> to vector<8x32xf32>
    %38 = arith.addf %33, %37 : vector<8x32xf32>
    %39 = arith.truncf %38 : vector<8x32xf32> to vector<8x32xbf16>
    %c0_15 = arith.constant 0 : index
    %c0_16 = arith.constant 0 : index
    %40 = vector.load %arg7[%c0_15, %c0_16] : memref<32x32xbf16, #tpu.memory_space<vmem>>, vector<32x32xbf16>
    %cst_17 = arith.constant dense<0.000000e+00> : vector<8x32xf32>
    %41 = tpu.matmul %30, %40, %cst_17 {dimension_numbers = #tpu.dot_dimension_numbers<[1], [0], [0], [1], [0, 0, 1, 1], [], []>} : vector<8x32xbf16>, vector<32x32xbf16>, vector<8x32xf32> -> vector<8x32xf32>
    %c0_18 = arith.constant 0 : index
    %c0_19 = arith.constant 0 : index
    %42 = vector.load %arg8[%c0_18, %c0_19] : memref<1x32xf32, #tpu.memory_space<vmem>>, vector<1x32xf32>
    %43 = vector.shape_cast %42 : vector<1x32xf32> to vector<32xf32>
    %44 = vector.shape_cast %43 : vector<32xf32> to vector<1x32xf32>
    %45 = vector.broadcast %44 : vector<1x32xf32> to vector<8x32xf32>
    %46 = arith.addf %41, %45 : vector<8x32xf32>
    %47 = arith.truncf %46 : vector<8x32xf32> to vector<8x32xbf16>
    %c0_20 = arith.constant 0 : index
    %c0_21 = arith.constant 0 : index
    %48 = vector.load %arg9[%c0_20, %c0_21] : memref<32x32xbf16, #tpu.memory_space<vmem>>, vector<32x32xbf16>
    %cst_22 = arith.constant dense<0.000000e+00> : vector<8x32xf32>
    %49 = tpu.matmul %30, %48, %cst_22 {dimension_numbers = #tpu.dot_dimension_numbers<[1], [0], [0], [1], [0, 0, 1, 1], [], []>} : vector<8x32xbf16>, vector<32x32xbf16>, vector<8x32xf32> -> vector<8x32xf32>
    %c0_23 = arith.constant 0 : index
    %c0_24 = arith.constant 0 : index
    %50 = vector.load %arg10[%c0_23, %c0_24] : memref<1x32xf32, #tpu.memory_space<vmem>>, vector<1x32xf32>
    %51 = vector.shape_cast %50 : vector<1x32xf32> to vector<32xf32>
    %52 = vector.shape_cast %51 : vector<32xf32> to vector<1x32xf32>
    %53 = vector.broadcast %52 : vector<1x32xf32> to vector<8x32xf32>
    %54 = arith.addf %49, %53 : vector<8x32xf32>
    %55 = arith.truncf %54 : vector<8x32xf32> to vector<8x32xbf16>
    %cst_25 = arith.constant 0.000000e+00 : f32
    %56 = vector.broadcast %cst_25 : f32 to vector<8x32xf32>
    %57 = vector.extract_strided_slice %39 {offsets = [0, 0], sizes = [8, 8], strides = [1, 1]} : vector<8x32xbf16> to vector<8x8xbf16>
    %58 = vector.extract_strided_slice %47 {offsets = [0, 0], sizes = [8, 8], strides = [1, 1]} : vector<8x32xbf16> to vector<8x8xbf16>
    %cst_26 = arith.constant dense<0.000000e+00> : vector<8x8xf32>
    %59 = tpu.matmul %57, %58, %cst_26 {dimension_numbers = #tpu.dot_dimension_numbers<[1], [1], [0], [0], [0, 0, 1, 0], [], []>} : vector<8x8xbf16>, vector<8x8xbf16>, vector<8x8xf32> -> vector<8x8xf32>
    %cst_27 = arith.constant dense<0xFF800000> : vector<8xf32>
    %60 = vector.multi_reduction <maximumf>, %59, %cst_27 [1] : vector<8x8xf32> to vector<8xf32>
    %61 = vector.shape_cast %60 : vector<8xf32> to vector<8x1xf32>
    %62 = vector.broadcast %61 : vector<8x1xf32> to vector<8x8xf32>
    %63 = arith.subf %59, %62 : vector<8x8xf32>
    %64 = math.exp %63 : vector<8x8xf32>
    %cst_28 = arith.constant dense<0.000000e+00> : vector<8xf32>
    %65 = vector.multi_reduction <add>, %64, %cst_28 [1] : vector<8x8xf32> to vector<8xf32>
    %66 = vector.shape_cast %65 : vector<8xf32> to vector<8x1xf32>
    %67 = tpu.reciprocal %66 {approx = true} : vector<8x1xf32> -> vector<8x1xf32>
    %68 = vector.broadcast %67 : vector<8x1xf32> to vector<8x8xf32>
    %69 = arith.mulf %64, %68 : vector<8x8xf32>
    %70 = arith.truncf %69 : vector<8x8xf32> to vector<8x8xbf16>
    %71 = vector.extract_strided_slice %55 {offsets = [0, 0], sizes = [8, 8], strides = [1, 1]} : vector<8x32xbf16> to vector<8x8xbf16>
    %cst_29 = arith.constant dense<0.000000e+00> : vector<8x8xf32>
    %72 = tpu.matmul %70, %71, %cst_29 {dimension_numbers = #tpu.dot_dimension_numbers<[1], [0], [0], [1], [0, 0, 1, 1], [], []>} : vector<8x8xbf16>, vector<8x8xbf16>, vector<8x8xf32> -> vector<8x8xf32>
    %73 = arith.truncf %72 : vector<8x8xf32> to vector<8x8xbf16>
    %c0_30 = arith.constant 0 : index
    %c0_31 = arith.constant 0 : index
    %c0_32 = arith.constant 0 : index
    %74 = vector.load %arg11[%c0_30, %c0_31, %c0_32] : memref<4x8x32xbf16, #tpu.memory_space<vmem>>, vector<1x8x32xbf16>
    %75 = vector.shape_cast %74 : vector<1x8x32xbf16> to vector<8x32xbf16>
    %cst_33 = arith.constant dense<0.000000e+00> : vector<8x32xf32>
    %76 = tpu.matmul %73, %75, %cst_33 {dimension_numbers = #tpu.dot_dimension_numbers<[1], [0], [0], [1], [0, 0, 1, 1], [], []>} : vector<8x8xbf16>, vector<8x32xbf16>, vector<8x32xf32> -> vector<8x32xf32>
    %77 = arith.addf %56, %76 : vector<8x32xf32>
    %78 = vector.extract_strided_slice %39 {offsets = [0, 8], sizes = [8, 8], strides = [1, 1]} : vector<8x32xbf16> to vector<8x8xbf16>
    %79 = vector.extract_strided_slice %47 {offsets = [0, 8], sizes = [8, 8], strides = [1, 1]} : vector<8x32xbf16> to vector<8x8xbf16>
    %cst_34 = arith.constant dense<0.000000e+00> : vector<8x8xf32>
    %80 = tpu.matmul %78, %79, %cst_34 {dimension_numbers = #tpu.dot_dimension_numbers<[1], [1], [0], [0], [0, 0, 1, 0], [], []>} : vector<8x8xbf16>, vector<8x8xbf16>, vector<8x8xf32> -> vector<8x8xf32>
    %cst_35 = arith.constant dense<0xFF800000> : vector<8xf32>
    %81 = vector.multi_reduction <maximumf>, %80, %cst_35 [1] : vector<8x8xf32> to vector<8xf32>
    %82 = vector.shape_cast %81 : vector<8xf32> to vector<8x1xf32>
    %83 = vector.broadcast %82 : vector<8x1xf32> to vector<8x8xf32>
    %84 = arith.subf %80, %83 : vector<8x8xf32>
    %85 = math.exp %84 : vector<8x8xf32>
    %cst_36 = arith.constant dense<0.000000e+00> : vector<8xf32>
    %86 = vector.multi_reduction <add>, %85, %cst_36 [1] : vector<8x8xf32> to vector<8xf32>
    %87 = vector.shape_cast %86 : vector<8xf32> to vector<8x1xf32>
    %88 = tpu.reciprocal %87 {approx = true} : vector<8x1xf32> -> vector<8x1xf32>
    %89 = vector.broadcast %88 : vector<8x1xf32> to vector<8x8xf32>
    %90 = arith.mulf %85, %89 : vector<8x8xf32>
    %91 = arith.truncf %90 : vector<8x8xf32> to vector<8x8xbf16>
    %92 = vector.extract_strided_slice %55 {offsets = [0, 8], sizes = [8, 8], strides = [1, 1]} : vector<8x32xbf16> to vector<8x8xbf16>
    %cst_37 = arith.constant dense<0.000000e+00> : vector<8x8xf32>
    %93 = tpu.matmul %91, %92, %cst_37 {dimension_numbers = #tpu.dot_dimension_numbers<[1], [0], [0], [1], [0, 0, 1, 1], [], []>} : vector<8x8xbf16>, vector<8x8xbf16>, vector<8x8xf32> -> vector<8x8xf32>
    %94 = arith.truncf %93 : vector<8x8xf32> to vector<8x8xbf16>
    %c1 = arith.constant 1 : index
    %c0_38 = arith.constant 0 : index
    %c0_39 = arith.constant 0 : index
    %95 = vector.load %arg11[%c1, %c0_38, %c0_39] : memref<4x8x32xbf16, #tpu.memory_space<vmem>>, vector<1x8x32xbf16>
    %96 = vector.shape_cast %95 : vector<1x8x32xbf16> to vector<8x32xbf16>
    %cst_40 = arith.constant dense<0.000000e+00> : vector<8x32xf32>
    %97 = tpu.matmul %94, %96, %cst_40 {dimension_numbers = #tpu.dot_dimension_numbers<[1], [0], [0], [1], [0, 0, 1, 1], [], []>} : vector<8x8xbf16>, vector<8x32xbf16>, vector<8x32xf32> -> vector<8x32xf32>
    %98 = arith.addf %77, %97 : vector<8x32xf32>
    %99 = vector.extract_strided_slice %39 {offsets = [0, 16], sizes = [8, 8], strides = [1, 1]} : vector<8x32xbf16> to vector<8x8xbf16>
    %100 = vector.extract_strided_slice %47 {offsets = [0, 16], sizes = [8, 8], strides = [1, 1]} : vector<8x32xbf16> to vector<8x8xbf16>
    %cst_41 = arith.constant dense<0.000000e+00> : vector<8x8xf32>
    %101 = tpu.matmul %99, %100, %cst_41 {dimension_numbers = #tpu.dot_dimension_numbers<[1], [1], [0], [0], [0, 0, 1, 0], [], []>} : vector<8x8xbf16>, vector<8x8xbf16>, vector<8x8xf32> -> vector<8x8xf32>
    %cst_42 = arith.constant dense<0xFF800000> : vector<8xf32>
    %102 = vector.multi_reduction <maximumf>, %101, %cst_42 [1] : vector<8x8xf32> to vector<8xf32>
    %103 = vector.shape_cast %102 : vector<8xf32> to vector<8x1xf32>
    %104 = vector.broadcast %103 : vector<8x1xf32> to vector<8x8xf32>
    %105 = arith.subf %101, %104 : vector<8x8xf32>
    %106 = math.exp %105 : vector<8x8xf32>
    %cst_43 = arith.constant dense<0.000000e+00> : vector<8xf32>
    %107 = vector.multi_reduction <add>, %106, %cst_43 [1] : vector<8x8xf32> to vector<8xf32>
    %108 = vector.shape_cast %107 : vector<8xf32> to vector<8x1xf32>
    %109 = tpu.reciprocal %108 {approx = true} : vector<8x1xf32> -> vector<8x1xf32>
    %110 = vector.broadcast %109 : vector<8x1xf32> to vector<8x8xf32>
    %111 = arith.mulf %106, %110 : vector<8x8xf32>
    %112 = arith.truncf %111 : vector<8x8xf32> to vector<8x8xbf16>
    %113 = vector.extract_strided_slice %55 {offsets = [0, 16], sizes = [8, 8], strides = [1, 1]} : vector<8x32xbf16> to vector<8x8xbf16>
    %cst_44 = arith.constant dense<0.000000e+00> : vector<8x8xf32>
    %114 = tpu.matmul %112, %113, %cst_44 {dimension_numbers = #tpu.dot_dimension_numbers<[1], [0], [0], [1], [0, 0, 1, 1], [], []>} : vector<8x8xbf16>, vector<8x8xbf16>, vector<8x8xf32> -> vector<8x8xf32>
    %115 = arith.truncf %114 : vector<8x8xf32> to vector<8x8xbf16>
    %c2 = arith.constant 2 : index
    %c0_45 = arith.constant 0 : index
    %c0_46 = arith.constant 0 : index
    %116 = vector.load %arg11[%c2, %c0_45, %c0_46] : memref<4x8x32xbf16, #tpu.memory_space<vmem>>, vector<1x8x32xbf16>
    %117 = vector.shape_cast %116 : vector<1x8x32xbf16> to vector<8x32xbf16>
    %cst_47 = arith.constant dense<0.000000e+00> : vector<8x32xf32>
    %118 = tpu.matmul %115, %117, %cst_47 {dimension_numbers = #tpu.dot_dimension_numbers<[1], [0], [0], [1], [0, 0, 1, 1], [], []>} : vector<8x8xbf16>, vector<8x32xbf16>, vector<8x32xf32> -> vector<8x32xf32>
    %119 = arith.addf %98, %118 : vector<8x32xf32>
    %120 = vector.extract_strided_slice %39 {offsets = [0, 24], sizes = [8, 8], strides = [1, 1]} : vector<8x32xbf16> to vector<8x8xbf16>
    %121 = vector.extract_strided_slice %47 {offsets = [0, 24], sizes = [8, 8], strides = [1, 1]} : vector<8x32xbf16> to vector<8x8xbf16>
    %cst_48 = arith.constant dense<0.000000e+00> : vector<8x8xf32>
    %122 = tpu.matmul %120, %121, %cst_48 {dimension_numbers = #tpu.dot_dimension_numbers<[1], [1], [0], [0], [0, 0, 1, 0], [], []>} : vector<8x8xbf16>, vector<8x8xbf16>, vector<8x8xf32> -> vector<8x8xf32>
    %cst_49 = arith.constant dense<0xFF800000> : vector<8xf32>
    %123 = vector.multi_reduction <maximumf>, %122, %cst_49 [1] : vector<8x8xf32> to vector<8xf32>
    %124 = vector.shape_cast %123 : vector<8xf32> to vector<8x1xf32>
    %125 = vector.broadcast %124 : vector<8x1xf32> to vector<8x8xf32>
    %126 = arith.subf %122, %125 : vector<8x8xf32>
    %127 = math.exp %126 : vector<8x8xf32>
    %cst_50 = arith.constant dense<0.000000e+00> : vector<8xf32>
    %128 = vector.multi_reduction <add>, %127, %cst_50 [1] : vector<8x8xf32> to vector<8xf32>
    %129 = vector.shape_cast %128 : vector<8xf32> to vector<8x1xf32>
    %130 = tpu.reciprocal %129 {approx = true} : vector<8x1xf32> -> vector<8x1xf32>
    %131 = vector.broadcast %130 : vector<8x1xf32> to vector<8x8xf32>
    %132 = arith.mulf %127, %131 : vector<8x8xf32>
    %133 = arith.truncf %132 : vector<8x8xf32> to vector<8x8xbf16>
    %134 = vector.extract_strided_slice %55 {offsets = [0, 24], sizes = [8, 8], strides = [1, 1]} : vector<8x32xbf16> to vector<8x8xbf16>
    %cst_51 = arith.constant dense<0.000000e+00> : vector<8x8xf32>
    %135 = tpu.matmul %133, %134, %cst_51 {dimension_numbers = #tpu.dot_dimension_numbers<[1], [0], [0], [1], [0, 0, 1, 1], [], []>} : vector<8x8xbf16>, vector<8x8xbf16>, vector<8x8xf32> -> vector<8x8xf32>
    %136 = arith.truncf %135 : vector<8x8xf32> to vector<8x8xbf16>
    %c3 = arith.constant 3 : index
    %c0_52 = arith.constant 0 : index
    %c0_53 = arith.constant 0 : index
    %137 = vector.load %arg11[%c3, %c0_52, %c0_53] : memref<4x8x32xbf16, #tpu.memory_space<vmem>>, vector<1x8x32xbf16>
    %138 = vector.shape_cast %137 : vector<1x8x32xbf16> to vector<8x32xbf16>
    %cst_54 = arith.constant dense<0.000000e+00> : vector<8x32xf32>
    %139 = tpu.matmul %136, %138, %cst_54 {dimension_numbers = #tpu.dot_dimension_numbers<[1], [0], [0], [1], [0, 0, 1, 1], [], []>} : vector<8x8xbf16>, vector<8x32xbf16>, vector<8x32xf32> -> vector<8x32xf32>
    %140 = arith.addf %119, %139 : vector<8x32xf32>
    %141 = arith.addf %1, %140 : vector<8x32xf32>
    %c0_55 = arith.constant 0 : index
    %c0_56 = arith.constant 0 : index
    %142 = vector.load %arg12[%c0_55, %c0_56] : memref<1x32xf32, #tpu.memory_space<vmem>>, vector<1x32xf32>
    %143 = vector.shape_cast %142 : vector<1x32xf32> to vector<32xf32>
    %144 = vector.shape_cast %143 : vector<32xf32> to vector<1x32xf32>
    %145 = vector.broadcast %144 : vector<1x32xf32> to vector<8x32xf32>
    %146 = arith.addf %141, %145 : vector<8x32xf32>
    %c0_57 = arith.constant 0 : index
    %c0_58 = arith.constant 0 : index
    %147 = vector.load %arg13[%c0_57, %c0_58] : memref<1x32xf32, #tpu.memory_space<vmem>>, vector<1x32xf32>
    %148 = vector.shape_cast %147 : vector<1x32xf32> to vector<32xf32>
    %c0_59 = arith.constant 0 : index
    %c0_60 = arith.constant 0 : index
    %149 = vector.load %arg14[%c0_59, %c0_60] : memref<1x32xf32, #tpu.memory_space<vmem>>, vector<1x32xf32>
    %150 = vector.shape_cast %149 : vector<1x32xf32> to vector<32xf32>
    %cst_61 = arith.constant dense<0.000000e+00> : vector<8xf32>
    %151 = vector.multi_reduction <add>, %146, %cst_61 [1] : vector<8x32xf32> to vector<8xf32>
    %152 = vector.shape_cast %151 : vector<8xf32> to vector<8x1xf32>
    %cst_62 = arith.constant 3.200000e+01 : f32
    %153 = vector.broadcast %cst_62 : f32 to vector<8x1xf32>
    %154 = arith.divf %152, %153 : vector<8x1xf32>
    %155 = vector.broadcast %154 : vector<8x1xf32> to vector<8x32xf32>
    %156 = arith.subf %146, %155 : vector<8x32xf32>
    %157 = arith.mulf %156, %156 : vector<8x32xf32>
    %cst_63 = arith.constant dense<0.000000e+00> : vector<8xf32>
    %158 = vector.multi_reduction <add>, %157, %cst_63 [1] : vector<8x32xf32> to vector<8xf32>
    %159 = vector.shape_cast %158 : vector<8xf32> to vector<8x1xf32>
    %cst_64 = arith.constant 3.200000e+01 : f32
    %160 = vector.broadcast %cst_64 : f32 to vector<8x1xf32>
    %161 = arith.divf %159, %160 : vector<8x1xf32>
    %162 = vector.broadcast %154 : vector<8x1xf32> to vector<8x32xf32>
    %163 = arith.subf %146, %162 : vector<8x32xf32>
    %cst_65 = arith.constant 9.99999974E-6 : f32
    %164 = vector.broadcast %cst_65 : f32 to vector<8x1xf32>
    %165 = arith.addf %161, %164 : vector<8x1xf32>
    %166 = math.rsqrt %165 : vector<8x1xf32>
    %167 = vector.broadcast %166 : vector<8x1xf32> to vector<8x32xf32>
    %168 = arith.mulf %163, %167 : vector<8x32xf32>
    %169 = vector.shape_cast %148 : vector<32xf32> to vector<1x32xf32>
    %170 = vector.broadcast %169 : vector<1x32xf32> to vector<8x32xf32>
    %171 = arith.mulf %168, %170 : vector<8x32xf32>
    %172 = vector.shape_cast %150 : vector<32xf32> to vector<1x32xf32>
    %173 = vector.broadcast %172 : vector<1x32xf32> to vector<8x32xf32>
    %174 = arith.addf %171, %173 : vector<8x32xf32>
    %175 = arith.truncf %174 : vector<8x32xf32> to vector<8x32xbf16>
    %c0_66 = arith.constant 0 : index
    %c0_67 = arith.constant 0 : index
    %176 = vector.load %arg15[%c0_66, %c0_67] : memref<32x128xbf16, #tpu.memory_space<vmem>>, vector<32x128xbf16>
    %cst_68 = arith.constant dense<0.000000e+00> : vector<8x128xf32>
    %177 = tpu.matmul %175, %176, %cst_68 {dimension_numbers = #tpu.dot_dimension_numbers<[1], [0], [0], [1], [0, 0, 1, 1], [], []>} : vector<8x32xbf16>, vector<32x128xbf16>, vector<8x128xf32> -> vector<8x128xf32>
    %c0_69 = arith.constant 0 : index
    %c0_70 = arith.constant 0 : index
    %178 = vector.load %arg16[%c0_69, %c0_70] : memref<1x128xf32, #tpu.memory_space<vmem>>, vector<1x128xf32>
    %179 = vector.shape_cast %178 : vector<1x128xf32> to vector<128xf32>
    %180 = vector.shape_cast %179 : vector<128xf32> to vector<1x128xf32>
    %181 = vector.broadcast %180 : vector<1x128xf32> to vector<8x128xf32>
    %182 = arith.addf %177, %181 : vector<8x128xf32>
    %cst_71 = arith.constant 1.702000e+00 : f32
    %183 = vector.broadcast %cst_71 : f32 to vector<8x128xf32>
    %184 = arith.mulf %183, %182 : vector<8x128xf32>
    %185 = arith.negf %184 : vector<8x128xf32>
    %186 = math.exp %185 : vector<8x128xf32>
    %cst_72 = arith.constant 1.000000e+00 : f32
    %187 = vector.broadcast %cst_72 : f32 to vector<8x128xf32>
    %188 = arith.addf %187, %186 : vector<8x128xf32>
    %189 = arith.divf %187, %188 : vector<8x128xf32>
    %190 = arith.mulf %182, %189 : vector<8x128xf32>
    %191 = arith.truncf %190 : vector<8x128xf32> to vector<8x128xbf16>
    %c0_73 = arith.constant 0 : index
    %c0_74 = arith.constant 0 : index
    %192 = vector.load %arg17[%c0_73, %c0_74] : memref<128x32xbf16, #tpu.memory_space<vmem>>, vector<128x32xbf16>
    %cst_75 = arith.constant dense<0.000000e+00> : vector<8x32xf32>
    %193 = tpu.matmul %191, %192, %cst_75 {dimension_numbers = #tpu.dot_dimension_numbers<[1], [0], [0], [1], [0, 0, 1, 1], [], []>} : vector<8x128xbf16>, vector<128x32xbf16>, vector<8x32xf32> -> vector<8x32xf32>
    %c0_76 = arith.constant 0 : index
    %c0_77 = arith.constant 0 : index
    %194 = vector.load %arg18[%c0_76, %c0_77] : memref<1x32xf32, #tpu.memory_space<vmem>>, vector<1x32xf32>
    %195 = vector.shape_cast %194 : vector<1x32xf32> to vector<32xf32>
    %196 = vector.shape_cast %195 : vector<32xf32> to vector<1x32xf32>
    %197 = vector.broadcast %196 : vector<1x32xf32> to vector<8x32xf32>
    %198 = arith.addf %193, %197 : vector<8x32xf32>
    %199 = arith.addf %146, %198 : vector<8x32xf32>
    %c0_78 = arith.constant 0 : index
    %c0_79 = arith.constant 0 : index
    %c0_80 = arith.constant 0 : index
    %200 = vector.load %arg19[%c0_78, %c0_79, %c0_80] : memref<1x8x32xf32, #tpu.memory_space<vmem>>, vector<1x8x32xf32>
    %201 = vector.shape_cast %200 : vector<1x8x32xf32> to vector<8x32xf32>
    %202 = vector.shape_cast %199 : vector<8x32xf32> to vector<1x8x32xf32>
    tpu.vector_store %arg19[%c0_78, %c0_79, %c0_80], %202 {strides = array<i32>} : memref<1x8x32xf32, #tpu.memory_space<vmem>>, vector<1x8x32xf32>,
    return
  }
  func.func @transform_0(%arg0: i32, %arg1: i32) -> (i32, i32, i32) {
    %c0_i32 = arith.constant 0 : i32
    %c0_i32_0 = arith.constant 0 : i32
    %c0_i32_1 = arith.constant 0 : i32
    return %arg0, %c0_i32, %c0_i32_0 : i32, i32, i32
  }
  func.func @transform_1(%arg0: i32, %arg1: i32) -> (i32, i32) {
    %c0_i32 = arith.constant 0 : i32
    %c0_i32_0 = arith.constant 0 : i32
    %c0_i32_1 = arith.constant 0 : i32
    return %c0_i32, %c0_i32_0 : i32, i32
  }
  func.func @transform_2(%arg0: i32, %arg1: i32) -> (i32, i32) {
    %c0_i32 = arith.constant 0 : i32
    %c0_i32_0 = arith.constant 0 : i32
    %c0_i32_1 = arith.constant 0 : i32
    return %c0_i32, %c0_i32_0 : i32, i32
  }
  func.func @transform_3(%arg0: i32, %arg1: i32) -> (i32, i32) {
    %c0_i32 = arith.constant 0 : i32
    %c0_i32_0 = arith.constant 0 : i32
    %c0_i32_1 = arith.constant 0 : i32
    return %c0_i32, %c0_i32_0 : i32, i32
  }
  func.func @transform_4(%arg0: i32, %arg1: i32) -> (i32, i32) {
    %c0_i32 = arith.constant 0 : i32
    %c0_i32_0 = arith.constant 0 : i32
    %c0_i32_1 = arith.constant 0 : i32
    return %c0_i32, %c0_i32_0 : i32, i32
  }
  func.func @transform_5(%arg0: i32, %arg1: i32) -> (i32, i32) {
    %c0_i32 = arith.constant 0 : i32
    %c0_i32_0 = arith.constant 0 : i32
    %c0_i32_1 = arith.constant 0 : i32
    return %c0_i32, %c0_i32_0 : i32, i32
  }
  func.func @transform_6(%arg0: i32, %arg1: i32) -> (i32, i32) {
    %c0_i32 = arith.constant 0 : i32
    %c0_i32_0 = arith.constant 0 : i32
    %c0_i32_1 = arith.constant 0 : i32
    return %c0_i32, %c0_i32_0 : i32, i32
  }
  func.func @transform_7(%arg0: i32, %arg1: i32) -> (i32, i32) {
    %c0_i32 = arith.constant 0 : i32
    %c0_i32_0 = arith.constant 0 : i32
    %c0_i32_1 = arith.constant 0 : i32
    return %c0_i32, %c0_i32_0 : i32, i32
  }
  func.func @transform_8(%arg0: i32, %arg1: i32) -> (i32, i32) {
    %c0_i32 = arith.constant 0 : i32
    %c0_i32_0 = arith.constant 0 : i32
    %c0_i32_1 = arith.constant 0 : i32
    return %c0_i32, %c0_i32_0 : i32, i32
  }
  func.func @transform_9(%arg0: i32, %arg1: i32) -> (i32, i32, i32) {
    %c0_i32 = arith.constant 0 : i32
    %c0_i32_0 = arith.constant 0 : i32
    %c0_i32_1 = arith.constant 0 : i32
    %c0_i32_2 = arith.constant 0 : i32
    return %c0_i32, %c0_i32_0, %c0_i32_1 : i32, i32, i32
  }
  func.func @transform_10(%arg0: i32, %arg1: i32) -> (i32, i32) {
    %c0_i32 = arith.constant 0 : i32
    %c0_i32_0 = arith.constant 0 : i32
    %c0_i32_1 = arith.constant 0 : i32
    return %c0_i32, %c0_i32_0 : i32, i32
  }
  func.func @transform_11(%arg0: i32, %arg1: i32) -> (i32, i32) {
    %c0_i32 = arith.constant 0 : i32
    %c0_i32_0 = arith.constant 0 : i32
    %c0_i32_1 = arith.constant 0 : i32
    return %c0_i32, %c0_i32_0 : i32, i32
  }
  func.func @transform_12(%arg0: i32, %arg1: i32) -> (i32, i32) {
    %c0_i32 = arith.constant 0 : i32
    %c0_i32_0 = arith.constant 0 : i32
    %c0_i32_1 = arith.constant 0 : i32
    return %c0_i32, %c0_i32_0 : i32, i32
  }
  func.func @transform_13(%arg0: i32, %arg1: i32) -> (i32, i32) {
    %c0_i32 = arith.constant 0 : i32
    %c0_i32_0 = arith.constant 0 : i32
    %c0_i32_1 = arith.constant 0 : i32
    return %c0_i32, %c0_i32_0 : i32, i32
  }
  func.func @transform_14(%arg0: i32, %arg1: i32) -> (i32, i32) {
    %c0_i32 = arith.constant 0 : i32
    %c0_i32_0 = arith.constant 0 : i32
    %c0_i32_1 = arith.constant 0 : i32
    return %c0_i32, %c0_i32_0 : i32, i32
  }
  func.func @transform_15(%arg0: i32, %arg1: i32) -> (i32, i32) {
    %c0_i32 = arith.constant 0 : i32
    %c0_i32_0 = arith.constant 0 : i32
    %c0_i32_1 = arith.constant 0 : i32
    return %c0_i32, %c0_i32_0 : i32, i32
  }
  func.func @transform_16(%arg0: i32, %arg1: i32) -> (i32, i32) {
    %c0_i32 = arith.constant 0 : i32
    %c0_i32_0 = arith.constant 0 : i32
    %c0_i32_1 = arith.constant 0 : i32
    return %c0_i32, %c0_i32_0 : i32, i32
  }
  func.func @transform_17(%arg0: i32, %arg1: i32) -> (i32, i32, i32) {
    %c0_i32 = arith.constant 0 : i32
    %c0_i32_0 = arith.constant 0 : i32
    return %arg0, %arg1, %c0_i32 : i32, i32, i32
  }
}

module attributes {stable_mosaic.version = 11 : i64} {
  func.func @_resblock_kernel(%arg0: i32, %arg1: i32, %arg2: memref<1x8x32xf32, #tpu.memory_space<vmem>>, %arg3: memref<1x32xf32, #tpu.memory_space<vmem>>, %arg4: memref<1x32xf32, #tpu.memory_space<vmem>>, %arg5: memref<32x32xbf16, #tpu.memory_space<vmem>>, %arg6: memref<1x32xf32, #tpu.memory_space<vmem>>, %arg7: memref<32x32xbf16, #tpu.memory_space<vmem>>, %arg8: memref<1x32xf32, #tpu.memory_space<vmem>>, %arg9: memref<32x32xbf16, #tpu.memory_space<vmem>>, %arg10: memref<1x32xf32, #tpu.memory_space<vmem>>, %arg11: memref<4x8x32xbf16, #tpu.memory_space<vmem>>, %arg12: memref<1x32xf32, #tpu.memory_space<vmem>>, %arg13: memref<1x32xf32, #tpu.memory_space<vmem>>, %arg14: memref<1x32xf32, #tpu.memory_space<vmem>>, %arg15: memref<32x128xbf16, #tpu.memory_space<vmem>>, %arg16: memref<1x128xf32, #tpu.memory_space<vmem>>, %arg17: memref<128x32xbf16, #tpu.memory_space<vmem>>, %arg18: memref<1x32xf32, #tpu.memory_space<vmem>>, %arg19: memref<1x8x32xf32, #tpu.memory_space<vmem>>) attributes {dimension_semantics = [#tpu.dimension_semantics<parallel>, #tpu.dimension_semantics<parallel>], iteration_bounds = array<i64: 2, 1>, scalar_prefetch = 0 : i64, scratch_operands = 0 : i64, tpu.core_type = #tpu.core_type<tc>, window_params = [{transform_indices = @transform_0, window_bounds = array<i64: 1, 8, 32>}, {pipeline_mode = #tpu.pipeline_mode<synchronous>, transform_indices = @transform_1, window_bounds = array<i64: 1, 32>}, {pipeline_mode = #tpu.pipeline_mode<synchronous>, transform_indices = @transform_2, window_bounds = array<i64: 1, 32>}, {pipeline_mode = #tpu.pipeline_mode<synchronous>, transform_indices = @transform_3, window_bounds = array<i64: 32, 32>}, {pipeline_mode = #tpu.pipeline_mode<synchronous>, transform_indices = @transform_4, window_bounds = array<i64: 1, 32>}, {pipeline_mode = #tpu.pipeline_mode<synchronous>, transform_indices = @transform_5, window_bounds = array<i64: 32, 32>}, {pipeline_mode = #tpu.pipeline_mode<synchronous>, transform_indices = @transform_6, window_bounds = array<i64: 1, 32>}, {pipeline_mode = #tpu.pipeline_mode<synchronous>, transform_indices = @transform_7, window_bounds = array<i64: 32, 32>}, {pipeline_mode = #tpu.pipeline_mode<synchronous>, transform_indices = @transform_8, window_bounds = array<i64: 1, 32>}, {pipeline_mode = #tpu.pipeline_mode<synchronous>, transform_indices = @transform_9, window_bounds = array<i64: 4, 8, 32>}, {pipeline_mode = #tpu.pipeline_mode<synchronous>, transform_indices = @transform_10, window_bounds = array<i64: 1, 32>}, {pipeline_mode = #tpu.pipeline_mode<synchronous>, transform_indices = @transform_11, window_bounds = array<i64: 1, 32>}, {pipeline_mode = #tpu.pipeline_mode<synchronous>, transform_indices = @transform_12, window_bounds = array<i64: 1, 32>}, {pipeline_mode = #tpu.pipeline_mode<synchronous>, transform_indices = @transform_13, window_bounds = array<i64: 32, 128>}, {pipeline_mode = #tpu.pipeline_mode<synchronous>, transform_indices = @transform_14, window_bounds = array<i64: 1, 128>}, {pipeline_mode = #tpu.pipeline_mode<synchronous>, transform_indices = @transform_15, window_bounds = array<i64: 128, 32>}, {pipeline_mode = #tpu.pipeline_mode<synchronous>, transform_indices = @transform_16, window_bounds = array<i64: 1, 32>}, {transform_indices = @transform_17, window_bounds = array<i64: 1, 8, 32>}]} {
    %c0 = arith.constant 0 : index
    %c0_0 = arith.constant 0 : index
    %c0_1 = arith.constant 0 : index
    %0 = vector.load %arg2[%c0, %c0_0, %c0_1] : memref<1x8x32xf32, #tpu.memory_space<vmem>>, vector<1x8x32xf32>
    %1 = vector.shape_cast %0 : vector<1x8x32xf32> to vector<8x32xf32>
    %c0_2 = arith.constant 0 : index
    %c0_3 = arith.constant 0 : index
    %2 = vector.load %arg3[%c0_2, %c0_3] : memref<1x32xf32, #tpu.memory_space<vmem>>, vector<1x32xf32>
    %3 = vector.shape_cast %2 : vector<1x32xf32> to vector<32xf32>
    %c0_4 = arith.constant 0 : index
    %c0_5 = arith.constant 0 : index
    %4 = vector.load %arg4[%c0_4, %c0_5] : memref<1x32xf32, #tpu.memory_space<vmem>>, vector<1x32xf32>
    %5 = vector.shape_cast %4 : vector<1x32xf32> to vector<32xf32>
    %cst = arith.constant dense<0.000000e+00> : vector<8xf32>
    %6 = vector.multi_reduction <add>, %1, %cst [1] : vector<8x32xf32> to vector<8xf32>
    %7 = vector.shape_cast %6 : vector<8xf32> to vector<8x1xf32>
    %cst_6 = arith.constant 3.200000e+01 : f32
    %8 = vector.broadcast %cst_6 : f32 to vector<8x1xf32>
    %9 = arith.divf %7, %8 : vector<8x1xf32>
    %10 = vector.broadcast %9 : vector<8x1xf32> to vector<8x32xf32>
    %11 = arith.subf %1, %10 : vector<8x32xf32>
    %12 = arith.mulf %11, %11 : vector<8x32xf32>
    %cst_7 = arith.constant dense<0.000000e+00> : vector<8xf32>
    %13 = vector.multi_reduction <add>, %12, %cst_7 [1] : vector<8x32xf32> to vector<8xf32>
    %14 = vector.shape_cast %13 : vector<8xf32> to vector<8x1xf32>
    %cst_8 = arith.constant 3.200000e+01 : f32
    %15 = vector.broadcast %cst_8 : f32 to vector<8x1xf32>
    %16 = arith.divf %14, %15 : vector<8x1xf32>
    %17 = vector.broadcast %9 : vector<8x1xf32> to vector<8x32xf32>
    %18 = arith.subf %1, %17 : vector<8x32xf32>
    %cst_9 = arith.constant 9.99999974E-6 : f32
    %19 = vector.broadcast %cst_9 : f32 to vector<8x1xf32>
    %20 = arith.addf %16, %19 : vector<8x1xf32>
    %21 = math.rsqrt %20 : vector<8x1xf32>
    %22 = vector.broadcast %21 : vector<8x1xf32> to vector<8x32xf32>
    %23 = arith.mulf %18, %22 : vector<8x32xf32>
    %24 = vector.shape_cast %3 : vector<32xf32> to vector<1x32xf32>
    %25 = vector.broadcast %24 : vector<1x32xf32> to vector<8x32xf32>
    %26 = arith.mulf %23, %25 : vector<8x32xf32>
    %27 = vector.shape_cast %5 : vector<32xf32> to vector<1x32xf32>
    %28 = vector.broadcast %27 : vector<1x32xf32> to vector<8x32xf32>
    %29 = arith.addf %26, %28 : vector<8x32xf32>
    %30 = arith.truncf %29 : vector<8x32xf32> to vector<8x32xbf16>
    %31 = arith.truncf %29 : vector<8x32xf32> to vector<8x32xbf16>
    %c0_10 = arith.constant 0 : index
    %c0_11 = arith.constant 0 : index
    %32 = vector.load %arg5[%c0_10, %c0_11] : memref<32x32xbf16, #tpu.memory_space<vmem>>, vector<32x32xbf16>
    %cst_12 = arith.constant dense<0.000000e+00> : vector<8x32xf32>
    %33 = tpu.matmul %31, %32, %cst_12 {dimension_numbers = #tpu.dot_dimension_numbers<[1], [0], [0], [1], [0, 0, 1, 1], [], []>} : vector<8x32xbf16>, vector<32x32xbf16>, vector<8x32xf32> -> vector<8x32xf32>
    %c0_13 = arith.constant 0 : index
    %c0_14 = arith.constant 0 : index
    %34 = vector.load %arg6[%c0_13, %c0_14] : memref<1x32xf32, #tpu.memory_space<vmem>>, vector<1x32xf32>
    %35 = vector.shape_cast %34 : vector<1x32xf32> to vector<32xf32>
    %36 = vector.shape_cast %35 : vector<32xf32> to vector<1x32xf32>
    %37 = vector.broadcast %36 : vector<1x32xf32> to vector<8x32xf32>
    %38 = arith.addf %33, %37 : vector<8x32xf32>
    %39 = arith.truncf %38 : vector<8x32xf32> to vector<8x32xbf16>
    %c0_15 = arith.constant 0 : index
    %c0_16 = arith.constant 0 : index
    %40 = vector.load %arg7[%c0_15, %c0_16] : memref<32x32xbf16, #tpu.memory_space<vmem>>, vector<32x32xbf16>
    %cst_17 = arith.constant dense<0.000000e+00> : vector<8x32xf32>
    %41 = tpu.matmul %30, %40, %cst_17 {dimension_numbers = #tpu.dot_dimension_numbers<[1], [0], [0], [1], [0, 0, 1, 1], [], []>} : vector<8x32xbf16>, vector<32x32xbf16>, vector<8x32xf32> -> vector<8x32xf32>
    %c0_18 = arith.constant 0 : index
    %c0_19 = arith.constant 0 : index
    %42 = vector.load %arg8[%c0_18, %c0_19] : memref<1x32xf32, #tpu.memory_space<vmem>>, vector<1x32xf32>
    %43 = vector.shape_cast %42 : vector<1x32xf32> to vector<32xf32>
    %44 = vector.shape_cast %43 : vector<32xf32> to vector<1x32xf32>
    %45 = vector.broadcast %44 : vector<1x32xf32> to vector<8x32xf32>
    %46 = arith.addf %41, %45 : vector<8x32xf32>
    %47 = arith.truncf %46 : vector<8x32xf32> to vector<8x32xbf16>
    %c0_20 = arith.constant 0 : index
    %c0_21 = arith.constant 0 : index
    %48 = vector.load %arg9[%c0_20, %c0_21] : memref<32x32xbf16, #tpu.memory_space<vmem>>, vector<32x32xbf16>
    %cst_22 = arith.constant dense<0.000000e+00> : vector<8x32xf32>
    %49 = tpu.matmul %30, %48, %cst_22 {dimension_numbers = #tpu.dot_dimension_numbers<[1], [0], [0], [1], [0, 0, 1, 1], [], []>} : vector<8x32xbf16>, vector<32x32xbf16>, vector<8x32xf32> -> vector<8x32xf32>
    %c0_23 = arith.constant 0 : index
    %c0_24 = arith.constant 0 : index
    %50 = vector.load %arg10[%c0_23, %c0_24] : memref<1x32xf32, #tpu.memory_space<vmem>>, vector<1x32xf32>
    %51 = vector.shape_cast %50 : vector<1x32xf32> to vector<32xf32>
    %52 = vector.shape_cast %51 : vector<32xf32> to vector<1x32xf32>
    %53 = vector.broadcast %52 : vector<1x32xf32> to vector<8x32xf32>
    %54 = arith.addf %49, %53 : vector<8x32xf32>
    %55 = arith.truncf %54 : vector<8x32xf32> to vector<8x32xbf16>
    %cst_25 = arith.constant 0.000000e+00 : f32
    %56 = vector.broadcast %cst_25 : f32 to vector<8x32xf32>
    %57 = vector.extract_strided_slice %39 {offsets = [0, 0], sizes = [8, 8], strides = [1, 1]} : vector<8x32xbf16> to vector<8x8xbf16>
    %58 = vector.extract_strided_slice %47 {offsets = [0, 0], sizes = [8, 8], strides = [1, 1]} : vector<8x32xbf16> to vector<8x8xbf16>
    %cst_26 = arith.constant dense<0.000000e+00> : vector<8x8xf32>
    %59 = tpu.matmul %57, %58, %cst_26 {dimension_numbers = #tpu.dot_dimension_numbers<[1], [1], [0], [0], [0, 0, 1, 0], [], []>} : vector<8x8xbf16>, vector<8x8xbf16>, vector<8x8xf32> -> vector<8x8xf32>
    %cst_27 = arith.constant dense<0xFF800000> : vector<8xf32>
    %60 = vector.multi_reduction <maximumf>, %59, %cst_27 [1] : vector<8x8xf32> to vector<8xf32>
    %61 = vector.shape_cast %60 : vector<8xf32> to vector<8x1xf32>
    %62 = vector.broadcast %61 : vector<8x1xf32> to vector<8x8xf32>
    %63 = arith.subf %59, %62 : vector<8x8xf32>
    %64 = math.exp %63 : vector<8x8xf32>
    %cst_28 = arith.constant dense<0.000000e+00> : vector<8xf32>
    %65 = vector.multi_reduction <add>, %64, %cst_28 [1] : vector<8x8xf32> to vector<8xf32>
    %66 = vector.shape_cast %65 : vector<8xf32> to vector<8x1xf32>
    %67 = tpu.reciprocal %66 {approx = true} : vector<8x1xf32> -> vector<8x1xf32>
    %68 = vector.broadcast %67 : vector<8x1xf32> to vector<8x8xf32>
    %69 = arith.mulf %64, %68 : vector<8x8xf32>
    %70 = arith.truncf %69 : vector<8x8xf32> to vector<8x8xbf16>
    %71 = vector.extract_strided_slice %55 {offsets = [0, 0], sizes = [8, 8], strides = [1, 1]} : vector<8x32xbf16> to vector<8x8xbf16>
    %cst_29 = arith.constant dense<0.000000e+00> : vector<8x8xf32>
    %72 = tpu.matmul %70, %71, %cst_29 {dimension_numbers = #tpu.dot_dimension_numbers<[1], [0], [0], [1], [0, 0, 1, 1], [], []>} : vector<8x8xbf16>, vector<8x8xbf16>, vector<8x8xf32> -> vector<8x8xf32>
    %73 = arith.truncf %72 : vector<8x8xf32> to vector<8x8xbf16>
    %c0_30 = arith.constant 0 : index
    %c0_31 = arith.constant 0 : index
    %c0_32 = arith.constant 0 : index
    %74 = vector.load %arg11[%c0_30, %c0_31, %c0_32] : memref<4x8x32xbf16, #tpu.memory_space<vmem>>, vector<1x8x32xbf16>
    %75 = vector.shape_cast %74 : vector<1x8x32xbf16> to vector<8x32xbf16>
    %cst_33 = arith.constant dense<0.000000e+00> : vector<8x32xf32>
    %76 = tpu.matmul %73, %75, %cst_33 {dimension_numbers = #tpu.dot_dimension_numbers<[1], [0], [0], [1], [0, 0, 1, 1], [], []>} : vector<8x8xbf16>, vector<8x32xbf16>, vector<8x32xf32> -> vector<8x32xf32>
    %77 = arith.addf %56, %76 : vector<8x32xf32>
    %78 = vector.extract_strided_slice %39 {offsets = [0, 8], sizes = [8, 8], strides = [1, 1]} : vector<8x32xbf16> to vector<8x8xbf16>
    %79 = vector.extract_strided_slice %47 {offsets = [0, 8], sizes = [8, 8], strides = [1, 1]} : vector<8x32xbf16> to vector<8x8xbf16>
    %cst_34 = arith.constant dense<0.000000e+00> : vector<8x8xf32>
    %80 = tpu.matmul %78, %79, %cst_34 {dimension_numbers = #tpu.dot_dimension_numbers<[1], [1], [0], [0], [0, 0, 1, 0], [], []>} : vector<8x8xbf16>, vector<8x8xbf16>, vector<8x8xf32> -> vector<8x8xf32>
    %cst_35 = arith.constant dense<0xFF800000> : vector<8xf32>
    %81 = vector.multi_reduction <maximumf>, %80, %cst_35 [1] : vector<8x8xf32> to vector<8xf32>
    %82 = vector.shape_cast %81 : vector<8xf32> to vector<8x1xf32>
    %83 = vector.broadcast %82 : vector<8x1xf32> to vector<8x8xf32>
    %84 = arith.subf %80, %83 : vector<8x8xf32>
    %85 = math.exp %84 : vector<8x8xf32>
    %cst_36 = arith.constant dense<0.000000e+00> : vector<8xf32>
    %86 = vector.multi_reduction <add>, %85, %cst_36 [1] : vector<8x8xf32> to vector<8xf32>
    %87 = vector.shape_cast %86 : vector<8xf32> to vector<8x1xf32>
    %88 = tpu.reciprocal %87 {approx = true} : vector<8x1xf32> -> vector<8x1xf32>
    %89 = vector.broadcast %88 : vector<8x1xf32> to vector<8x8xf32>
    %90 = arith.mulf %85, %89 : vector<8x8xf32>
    %91 = arith.truncf %90 : vector<8x8xf32> to vector<8x8xbf16>
    %92 = vector.extract_strided_slice %55 {offsets = [0, 8], sizes = [8, 8], strides = [1, 1]} : vector<8x32xbf16> to vector<8x8xbf16>
    %cst_37 = arith.constant dense<0.000000e+00> : vector<8x8xf32>
    %93 = tpu.matmul %91, %92, %cst_37 {dimension_numbers = #tpu.dot_dimension_numbers<[1], [0], [0], [1], [0, 0, 1, 1], [], []>} : vector<8x8xbf16>, vector<8x8xbf16>, vector<8x8xf32> -> vector<8x8xf32>
    %94 = arith.truncf %93 : vector<8x8xf32> to vector<8x8xbf16>
    %c1 = arith.constant 1 : index
    %c0_38 = arith.constant 0 : index
    %c0_39 = arith.constant 0 : index
    %95 = vector.load %arg11[%c1, %c0_38, %c0_39] : memref<4x8x32xbf16, #tpu.memory_space<vmem>>, vector<1x8x32xbf16>
    %96 = vector.shape_cast %95 : vector<1x8x32xbf16> to vector<8x32xbf16>
    %cst_40 = arith.constant dense<0.000000e+00> : vector<8x32xf32>
    %97 = tpu.matmul %94, %96, %cst_40 {dimension_numbers = #tpu.dot_dimension_numbers<[1], [0], [0], [1], [0, 0, 1, 1], [], []>} : vector<8x8xbf16>, vector<8x32xbf16>, vector<8x32xf32> -> vector<8x32xf32>
    %98 = arith.addf %77, %97 : vector<8x32xf32>
    %99 = vector.extract_strided_slice %39 {offsets = [0, 16], sizes = [8, 8], strides = [1, 1]} : vector<8x32xbf16> to vector<8x8xbf16>
    %100 = vector.extract_strided_slice %47 {offsets = [0, 16], sizes = [8, 8], strides = [1, 1]} : vector<8x32xbf16> to vector<8x8xbf16>
    %cst_41 = arith.constant dense<0.000000e+00> : vector<8x8xf32>
    %101 = tpu.matmul %99, %100, %cst_41 {dimension_numbers = #tpu.dot_dimension_numbers<[1], [1], [0], [0], [0, 0, 1, 0], [], []>} : vector<8x8xbf16>, vector<8x8xbf16>, vector<8x8xf32> -> vector<8x8xf32>
    %cst_42 = arith.constant dense<0xFF800000> : vector<8xf32>
    %102 = vector.multi_reduction <maximumf>, %101, %cst_42 [1] : vector<8x8xf32> to vector<8xf32>
    %103 = vector.shape_cast %102 : vector<8xf32> to vector<8x1xf32>
    %104 = vector.broadcast %103 : vector<8x1xf32> to vector<8x8xf32>
    %105 = arith.subf %101, %104 : vector<8x8xf32>
    %106 = math.exp %105 : vector<8x8xf32>
    %cst_43 = arith.constant dense<0.000000e+00> : vector<8xf32>
    %107 = vector.multi_reduction <add>, %106, %cst_43 [1] : vector<8x8xf32> to vector<8xf32>
    %108 = vector.shape_cast %107 : vector<8xf32> to vector<8x1xf32>
    %109 = tpu.reciprocal %108 {approx = true} : vector<8x1xf32> -> vector<8x1xf32>
    %110 = vector.broadcast %109 : vector<8x1xf32> to vector<8x8xf32>
    %111 = arith.mulf %106, %110 : vector<8x8xf32>
    %112 = arith.truncf %111 : vector<8x8xf32> to vector<8x8xbf16>
    %113 = vector.extract_strided_slice %55 {offsets = [0, 16], sizes = [8, 8], strides = [1, 1]} : vector<8x32xbf16> to vector<8x8xbf16>
    %cst_44 = arith.constant dense<0.000000e+00> : vector<8x8xf32>
    %114 = tpu.matmul %112, %113, %cst_44 {dimension_numbers = #tpu.dot_dimension_numbers<[1], [0], [0], [1], [0, 0, 1, 1], [], []>} : vector<8x8xbf16>, vector<8x8xbf16>, vector<8x8xf32> -> vector<8x8xf32>
    %115 = arith.truncf %114 : vector<8x8xf32> to vector<8x8xbf16>
    %c2 = arith.constant 2 : index
    %c0_45 = arith.constant 0 : index
    %c0_46 = arith.constant 0 : index
    %116 = vector.load %arg11[%c2, %c0_45, %c0_46] : memref<4x8x32xbf16, #tpu.memory_space<vmem>>, vector<1x8x32xbf16>
    %117 = vector.shape_cast %116 : vector<1x8x32xbf16> to vector<8x32xbf16>
    %cst_47 = arith.constant dense<0.000000e+00> : vector<8x32xf32>
    %118 = tpu.matmul %115, %117, %cst_47 {dimension_numbers = #tpu.dot_dimension_numbers<[1], [0], [0], [1], [0, 0, 1, 1], [], []>} : vector<8x8xbf16>, vector<8x32xbf16>, vector<8x32xf32> -> vector<8x32xf32>
    %119 = arith.addf %98, %118 : vector<8x32xf32>
    %120 = vector.extract_strided_slice %39 {offsets = [0, 24], sizes = [8, 8], strides = [1, 1]} : vector<8x32xbf16> to vector<8x8xbf16>
    %121 = vector.extract_strided_slice %47 {offsets = [0, 24], sizes = [8, 8], strides = [1, 1]} : vector<8x32xbf16> to vector<8x8xbf16>
    %cst_48 = arith.constant dense<0.000000e+00> : vector<8x8xf32>
    %122 = tpu.matmul %120, %121, %cst_48 {dimension_numbers = #tpu.dot_dimension_numbers<[1], [1], [0], [0], [0, 0, 1, 0], [], []>} : vector<8x8xbf16>, vector<8x8xbf16>, vector<8x8xf32> -> vector<8x8xf32>
    %cst_49 = arith.constant dense<0xFF800000> : vector<8xf32>
    %123 = vector.multi_reduction <maximumf>, %122, %cst_49 [1] : vector<8x8xf32> to vector<8xf32>
    %124 = vector.shape_cast %123 : vector<8xf32> to vector<8x1xf32>
    %125 = vector.broadcast %124 : vector<8x1xf32> to vector<8x8xf32>
    %126 = arith.subf %122, %125 : vector<8x8xf32>
    %127 = math.exp %126 : vector<8x8xf32>
    %cst_50 = arith.constant dense<0.000000e+00> : vector<8xf32>
    %128 = vector.multi_reduction <add>, %127, %cst_50 [1] : vector<8x8xf32> to vector<8xf32>
    %129 = vector.shape_cast %128 : vector<8xf32> to vector<8x1xf32>
    %130 = tpu.reciprocal %129 {approx = true} : vector<8x1xf32> -> vector<8x1xf32>
    %131 = vector.broadcast %130 : vector<8x1xf32> to vector<8x8xf32>
    %132 = arith.mulf %127, %131 : vector<8x8xf32>
    %133 = arith.truncf %132 : vector<8x8xf32> to vector<8x8xbf16>
    %134 = vector.extract_strided_slice %55 {offsets = [0, 24], sizes = [8, 8], strides = [1, 1]} : vector<8x32xbf16> to vector<8x8xbf16>
    %cst_51 = arith.constant dense<0.000000e+00> : vector<8x8xf32>
    %135 = tpu.matmul %133, %134, %cst_51 {dimension_numbers = #tpu.dot_dimension_numbers<[1], [0], [0], [1], [0, 0, 1, 1], [], []>} : vector<8x8xbf16>, vector<8x8xbf16>, vector<8x8xf32> -> vector<8x8xf32>
    %136 = arith.truncf %135 : vector<8x8xf32> to vector<8x8xbf16>
    %c3 = arith.constant 3 : index
    %c0_52 = arith.constant 0 : index
    %c0_53 = arith.constant 0 : index
    %137 = vector.load %arg11[%c3, %c0_52, %c0_53] : memref<4x8x32xbf16, #tpu.memory_space<vmem>>, vector<1x8x32xbf16>
    %138 = vector.shape_cast %137 : vector<1x8x32xbf16> to vector<8x32xbf16>
    %cst_54 = arith.constant dense<0.000000e+00> : vector<8x32xf32>
    %139 = tpu.matmul %136, %138, %cst_54 {dimension_numbers = #tpu.dot_dimension_numbers<[1], [0], [0], [1], [0, 0, 1, 1], [], []>} : vector<8x8xbf16>, vector<8x32xbf16>, vector<8x32xf32> -> vector<8x32xf32>
    %140 = arith.addf %119, %139 : vector<8x32xf32>
    %141 = arith.addf %1, %140 : vector<8x32xf32>
    %c0_55 = arith.constant 0 : index
    %c0_56 = arith.constant 0 : index
    %142 = vector.load %arg12[%c0_55, %c0_56] : memref<1x32xf32, #tpu.memory_space<vmem>>, vector<1x32xf32>
    %143 = vector.shape_cast %142 : vector<1x32xf32> to vector<32xf32>
    %144 = vector.shape_cast %143 : vector<32xf32> to vector<1x32xf32>
    %145 = vector.broadcast %144 : vector<1x32xf32> to vector<8x32xf32>
    %146 = arith.addf %141, %145 : vector<8x32xf32>
    %c0_57 = arith.constant 0 : index
    %c0_58 = arith.constant 0 : index
    %147 = vector.load %arg13[%c0_57, %c0_58] : memref<1x32xf32, #tpu.memory_space<vmem>>, vector<1x32xf32>
    %148 = vector.shape_cast %147 : vector<1x32xf32> to vector<32xf32>
    %c0_59 = arith.constant 0 : index
    %c0_60 = arith.constant 0 : index
    %149 = vector.load %arg14[%c0_59, %c0_60] : memref<1x32xf32, #tpu.memory_space<vmem>>, vector<1x32xf32>
    %150 = vector.shape_cast %149 : vector<1x32xf32> to vector<32xf32>
    %cst_61 = arith.constant dense<0.000000e+00> : vector<8xf32>
    %151 = vector.multi_reduction <add>, %146, %cst_61 [1] : vector<8x32xf32> to vector<8xf32>
    %152 = vector.shape_cast %151 : vector<8xf32> to vector<8x1xf32>
    %cst_62 = arith.constant 3.200000e+01 : f32
    %153 = vector.broadcast %cst_62 : f32 to vector<8x1xf32>
    %154 = arith.divf %152, %153 : vector<8x1xf32>
    %155 = vector.broadcast %154 : vector<8x1xf32> to vector<8x32xf32>
    %156 = arith.subf %146, %155 : vector<8x32xf32>
    %157 = arith.mulf %156, %156 : vector<8x32xf32>
    %cst_63 = arith.constant dense<0.000000e+00> : vector<8xf32>
    %158 = vector.multi_reduction <add>, %157, %cst_63 [1] : vector<8x32xf32> to vector<8xf32>
    %159 = vector.shape_cast %158 : vector<8xf32> to vector<8x1xf32>
    %cst_64 = arith.constant 3.200000e+01 : f32
    %160 = vector.broadcast %cst_64 : f32 to vector<8x1xf32>
    %161 = arith.divf %159, %160 : vector<8x1xf32>
    %162 = vector.broadcast %154 : vector<8x1xf32> to vector<8x32xf32>
    %163 = arith.subf %146, %162 : vector<8x32xf32>
    %cst_65 = arith.constant 9.99999974E-6 : f32
    %164 = vector.broadcast %cst_65 : f32 to vector<8x1xf32>
    %165 = arith.addf %161, %164 : vector<8x1xf32>
    %166 = math.rsqrt %165 : vector<8x1xf32>
    %167 = vector.broadcast %166 : vector<8x1xf32> to vector<8x32xf32>
    %168 = arith.mulf %163, %167 : vector<8x32xf32>
    %169 = vector.shape_cast %148 : vector<32xf32> to vector<1x32xf32>
    %170 = vector.broadcast %169 : vector<1x32xf32> to vector<8x32xf32>
    %171 = arith.mulf %168, %170 : vector<8x32xf32>
    %172 = vector.shape_cast %150 : vector<32xf32> to vector<1x32xf32>
    %173 = vector.broadcast %172 : vector<1x32xf32> to vector<8x32xf32>
    %174 = arith.addf %171, %173 : vector<8x32xf32>
    %175 = arith.truncf %174 : vector<8x32xf32> to vector<8x32xbf16>
    %c0_66 = arith.constant 0 : index
    %c0_67 = arith.constant 0 : index
    %176 = vector.load %arg15[%c0_66, %c0_67] : memref<32x128xbf16, #tpu.memory_space<vmem>>, vector<32x128xbf16>
    %cst_68 = arith.constant dense<0.000000e+00> : vector<8x128xf32>
    %177 = tpu.matmul %175, %176, %cst_68 {dimension_numbers = #tpu.dot_dimension_numbers<[1], [0], [0], [1], [0, 0, 1, 1], [], []>} : vector<8x32xbf16>, vector<32x128xbf16>, vector<8x128xf32> -> vector<8x128xf32>
    %c0_69 = arith.constant 0 : index
    %c0_70 = arith.constant 0 : index
    %178 = vector.load %arg16[%c0_69, %c0_70] : memref<1x128xf32, #tpu.memory_space<vmem>>, vector<1x128xf32>
    %179 = vector.shape_cast %178 : vector<1x128xf32> to vector<128xf32>
    %180 = vector.shape_cast %179 : vector<128xf32> to vector<1x128xf32>
    %181 = vector.broadcast %180 : vector<1x128xf32> to vector<8x128xf32>
    %182 = arith.addf %177, %181 : vector<8x128xf32>
    %cst_71 = arith.constant 1.702000e+00 : f32
    %183 = vector.broadcast %cst_71 : f32 to vector<8x128xf32>
    %184 = arith.mulf %183, %182 : vector<8x128xf32>
    %185 = arith.negf %184 : vector<8x128xf32>
    %186 = math.exp %185 : vector<8x128xf32>
    %cst_72 = arith.constant 1.000000e+00 : f32
    %187 = vector.broadcast %cst_72 : f32 to vector<8x128xf32>
    %188 = arith.addf %187, %186 : vector<8x128xf32>
    %189 = arith.divf %187, %188 : vector<8x128xf32>
    %190 = arith.mulf %182, %189 : vector<8x128xf32>
    %191 = arith.truncf %190 : vector<8x128xf32> to vector<8x128xbf16>
    %c0_73 = arith.constant 0 : index
    %c0_74 = arith.constant 0 : index
    %192 = vector.load %arg17[%c0_73, %c0_74] : memref<128x32xbf16, #tpu.memory_space<vmem>>, vector<128x32xbf16>
    %cst_75 = arith.constant dense<0.000000e+00> : vector<8x32xf32>
    %193 = tpu.matmul %191, %192, %cst_75 {dimension_numbers = #tpu.dot_dimension_numbers<[1], [0], [0], [1], [0, 0, 1, 1], [], []>} : vector<8x128xbf16>, vector<128x32xbf16>, vector<8x32xf32> -> vector<8x32xf32>
    %c0_76 = arith.constant 0 : index
    %c0_77 = arith.constant 0 : index
    %194 = vector.load %arg18[%c0_76, %c0_77] : memref<1x32xf32, #tpu.memory_space<vmem>>, vector<1x32xf32>
    %195 = vector.shape_cast %194 : vector<1x32xf32> to vector<32xf32>
    %196 = vector.shape_cast %195 : vector<32xf32> to vector<1x32xf32>
    %197 = vector.broadcast %196 : vector<1x32xf32> to vector<8x32xf32>
    %198 = arith.addf %193, %197 : vector<8x32xf32>
    %199 = arith.addf %146, %198 : vector<8x32xf32>
    %c0_78 = arith.constant 0 : index
    %c0_79 = arith.constant 0 : index
    %c0_80 = arith.constant 0 : index
    %200 = vector.load %arg19[%c0_78, %c0_79, %c0_80] : memref<1x8x32xf32, #tpu.memory_space<vmem>>, vector<1x8x32xf32>
    %201 = vector.shape_cast %200 : vector<1x8x32xf32> to vector<8x32xf32>
    %202 = vector.shape_cast %199 : vector<8x32xf32> to vector<1x8x32xf32>
    tpu.vector_store %arg19[%c0_78, %c0_79, %c0_80], %202 {strides = array<i32>} : memref<1x8x32xf32, #tpu.memory_space<vmem>>, vector<1x8x32xf32>,
    return
  }
  func.func @transform_0(%arg0: i32, %arg1: i32) -> (i32, i32, i32) {
    %c0_i32 = arith.constant 0 : i32
    %c0_i32_0 = arith.constant 0 : i32
    %c0_i32_1 = arith.constant 0 : i32
    return %arg0, %c0_i32, %c0_i32_0 : i32, i32, i32
  }
  func.func @transform_1(%arg0: i32, %arg1: i32) -> (i32, i32) {
    %c0_i32 = arith.constant 0 : i32
    %c0_i32_0 = arith.constant 0 : i32
    %c0_i32_1 = arith.constant 0 : i32
    return %c0_i32, %c0_i32_0 : i32, i32
  }
  func.func @transform_2(%arg0: i32, %arg1: i32) -> (i32, i32) {
    %c0_i32 = arith.constant 0 : i32
    %c0_i32_0 = arith.constant 0 : i32
    %c0_i32_1 = arith.constant 0 : i32
    return %c0_i32, %c0_i32_0 : i32, i32
  }
  func.func @transform_3(%arg0: i32, %arg1: i32) -> (i32, i32) {
    %c0_i32 = arith.constant 0 : i32
    %c0_i32_0 = arith.constant 0 : i32
    %c0_i32_1 = arith.constant 0 : i32
    return %c0_i32, %c0_i32_0 : i32, i32
  }
  func.func @transform_4(%arg0: i32, %arg1: i32) -> (i32, i32) {
    %c0_i32 = arith.constant 0 : i32
    %c0_i32_0 = arith.constant 0 : i32
    %c0_i32_1 = arith.constant 0 : i32
    return %c0_i32, %c0_i32_0 : i32, i32
  }
  func.func @transform_5(%arg0: i32, %arg1: i32) -> (i32, i32) {
    %c0_i32 = arith.constant 0 : i32
    %c0_i32_0 = arith.constant 0 : i32
    %c0_i32_1 = arith.constant 0 : i32
    return %c0_i32, %c0_i32_0 : i32, i32
  }
  func.func @transform_6(%arg0: i32, %arg1: i32) -> (i32, i32) {
    %c0_i32 = arith.constant 0 : i32
    %c0_i32_0 = arith.constant 0 : i32
    %c0_i32_1 = arith.constant 0 : i32
    return %c0_i32, %c0_i32_0 : i32, i32
  }
  func.func @transform_7(%arg0: i32, %arg1: i32) -> (i32, i32) {
    %c0_i32 = arith.constant 0 : i32
    %c0_i32_0 = arith.constant 0 : i32
    %c0_i32_1 = arith.constant 0 : i32
    return %c0_i32, %c0_i32_0 : i32, i32
  }
  func.func @transform_8(%arg0: i32, %arg1: i32) -> (i32, i32) {
    %c0_i32 = arith.constant 0 : i32
    %c0_i32_0 = arith.constant 0 : i32
    %c0_i32_1 = arith.constant 0 : i32
    return %c0_i32, %c0_i32_0 : i32, i32
  }
  func.func @transform_9(%arg0: i32, %arg1: i32) -> (i32, i32, i32) {
    %c0_i32 = arith.constant 0 : i32
    %c0_i32_0 = arith.constant 0 : i32
    %c0_i32_1 = arith.constant 0 : i32
    %c0_i32_2 = arith.constant 0 : i32
    return %c0_i32, %c0_i32_0, %c0_i32_1 : i32, i32, i32
  }
  func.func @transform_10(%arg0: i32, %arg1: i32) -> (i32, i32) {
    %c0_i32 = arith.constant 0 : i32
    %c0_i32_0 = arith.constant 0 : i32
    %c0_i32_1 = arith.constant 0 : i32
    return %c0_i32, %c0_i32_0 : i32, i32
  }
  func.func @transform_11(%arg0: i32, %arg1: i32) -> (i32, i32) {
    %c0_i32 = arith.constant 0 : i32
    %c0_i32_0 = arith.constant 0 : i32
    %c0_i32_1 = arith.constant 0 : i32
    return %c0_i32, %c0_i32_0 : i32, i32
  }
  func.func @transform_12(%arg0: i32, %arg1: i32) -> (i32, i32) {
    %c0_i32 = arith.constant 0 : i32
    %c0_i32_0 = arith.constant 0 : i32
    %c0_i32_1 = arith.constant 0 : i32
    return %c0_i32, %c0_i32_0 : i32, i32
  }
  func.func @transform_13(%arg0: i32, %arg1: i32) -> (i32, i32) {
    %c0_i32 = arith.constant 0 : i32
    %c0_i32_0 = arith.constant 0 : i32
    %c0_i32_1 = arith.constant 0 : i32
    return %c0_i32, %c0_i32_0 : i32, i32
  }
  func.func @transform_14(%arg0: i32, %arg1: i32) -> (i32, i32) {
    %c0_i32 = arith.constant 0 : i32
    %c0_i32_0 = arith.constant 0 : i32
    %c0_i32_1 = arith.constant 0 : i32
    return %c0_i32, %c0_i32_0 : i32, i32
  }
  func.func @transform_15(%arg0: i32, %arg1: i32) -> (i32, i32) {
    %c0_i32 = arith.constant 0 : i32
    %c0_i32_0 = arith.constant 0 : i32
    %c0_i32_1 = arith.constant 0 : i32
    return %c0_i32, %c0_i32_0 : i32, i32
  }
  func.func @transform_16(%arg0: i32, %arg1: i32) -> (i32, i32) {
    %c0_i32 = arith.constant 0 : i32
    %c0_i32_0 = arith.constant 0 : i32
    %c0_i32_1 = arith.constant 0 : i32
    return %c0_i32, %c0_i32_0 : i32, i32
  }
  func.func @transform_17(%arg0: i32, %arg1: i32) -> (i32, i32, i32) {
    %c0_i32 = arith.constant 0 : i32
    %c0_i32_0 = arith.constant 0 : i32
    return %arg0, %arg1, %c0_i32 : i32, i32, i32
  }
}

</mosaic_0001>

<bundles_post_ra>
// kernel: tpu_custom_call.1
= control target key start
LH: loop header
LB: loop body
LE: loop exit
PB: predicated region body
PF: predicated region fallthrough
CT: control target
= control target key end

     0   :  { %s2866_s0 = inlined_call_operand.vmem [shape: f32[2,8,32], index: 0, kind: input, shape index: {}]   ;;  %s2867_s1 = inlined_call_operand.vmem [shape: f32[1,32], index: 1, kind: input, shape index: {}]   ;;  %s2868_s2 = inlined_call_operand.vmem [shape: f32[1,32], index: 2, kind: input, shape index: {}]   ;;  %s2869_s3 = inlined_call_operand.vmem [shape: bf16[32,32], index: 3, kind: input, shape index: {}]   ;;  %s2870_s4 = inlined_call_operand.hbm [shape: f32[1,32], index: 4, kind: input, shape index: {}]   ;;  %s2871_s5 = inlined_call_operand.vmem [shape: bf16[32,32], index: 5, kind: input, shape index: {}]   ;;  %s2872_s6 = inlined_call_operand.hbm [shape: f32[1,32], index: 6, kind: input, shape index: {}]   ;;  %s2873_s7 = inlined_call_operand.vmem [shape: bf16[32,32], index: 7, kind: input, shape index: {}]   ;;  %s2874_s8 = inlined_call_operand.hbm [shape: f32[1,32], index: 8, kind: input, shape index: {}]   ;;  %s2875_s9 = inlined_call_operand.vmem [shape: bf16[4,8,32], index: 9, kind: input, shape index: {}]   ;;  %s2876_s10 = inlined_call_operand.vmem [shape: f32[1,32], index: 10, kind: input, shape index: {}]   ;;  %s2877_s11 = inlined_call_operand.vmem [shape: f32[1,32], index: 11, kind: input, shape index: {}]   ;;  %s2878_s12 = inlined_call_operand.vmem [shape: f32[1,32], index: 12, kind: input, shape index: {}]   ;;  %s2879_s13 = inlined_call_operand.vmem [shape: bf16[32,128], index: 13, kind: input, shape index: {}]   ;;  %s2880_s14 = inlined_call_operand.vmem [shape: f32[1,128], index: 14, kind: input, shape index: {}]   ;;  %s2881_s15 = inlined_call_operand.vmem [shape: bf16[128,32], index: 15, kind: input, shape index: {}]   ;;  %s2882_s16 = inlined_call_operand.vmem [shape: f32[1,32], index: 16, kind: input, shape index: {}]   ;;  %s2883_s17 = inlined_call_operand.hbm [shape: f32[2,8,32], index: 17, kind: output, shape index: {}]  }
   0x1   :  { %2898 = sst [smem:[#allocation20_spill]] %s2866_s0 }
   0x2   :  { %2899 = sst [smem:[#allocation21_spill]] %s2867_s1 }
   0x3   :  { %2900 = sst [smem:[#allocation22_spill]] %s2872_s6 }
   0x4   :  { %2901 = sst [smem:[#allocation23_spill]] %s2882_s16 }
   0x5   :  { %2902 = sst [smem:[#allocation24_spill]] %s2883_s17 }
   0x6   :  { %22 = vsyncpa [#allocation3], 0 }
   0x7   :  { %23 = vsyncpa [#allocation6], 0 }
   0x8   :  { %24 = vsyncpa [#allocation4], 0 }
   0x9   :  { %26 = vsyncpa [#allocation4 + $0x1], 0  ;;  %s2436_s24 = smov 0   ;;  %s2438_s25 = smov 0  }
   0xa   :  { %s2440_s26 = smov 0   ;;  %s2442_s27 = smov 0  }
   0xb   :  { %s2444_s28 = smov 0   ;;  %s2446_s29 = smov 0  }
   0xc LB: > { %2903 = sst [smem:[#allocation12_spill]] %s2315_s24  ;;  %s1802_s0 = sadd.s32 4294967295, %s2335_s29   ;;  %s2335_s29 = sphi %s2446_s29, %s32_s29   ;;  %s2331_s28 = sphi %s2444_s28, %s2934_s28   ;;  %s2327_s27 = sphi %s2442_s27, %s2933_s27   ;;  %s2323_s26 = sphi %s2440_s26, %s2932_s26   ;;  %s2319_s25 = sphi %s2438_s25, %s2936_s25   ;;  %s2315_s24 = sphi %s2436_s24, %s2935_s24  }
   0xd   : > { %2904 = sst [smem:[#allocation13_spill]] %s2323_s26  ;;  %s1803_s30 = sadd.s32 4294967294, %s2335_s29  }
   0xe   : > { %2905 = sst [smem:[#allocation14_spill]] %s2331_s28  ;;  %s44_s18 = sadd.s32 1, %s2331_s28 }
   0xf   : > { %2906 = sst [smem:[#allocation15_spill]] %s2335_s29  ;;  %s415_s19 = sadd.s32 1, %s2323_s26 }
  0x10   : > { %p46_p0 = scmp.ge.s32.totalorder %s44_s18, 2  ;;  %p425_p1 = scmp.ne.s32.totalorder %s2323_s26, %s2319_s25 }
  0x11   : > { %p426_p2 = scmp.eq.s32.totalorder %s1802_s0, 1  ;;  %p431_p3 = scmp.ne.s32.totalorder %s2319_s25, %s2315_s24 }
  0x12   : > { %s2938_s18 = smov (%p46_p0, %s44_s18), 0  ;;  %p432_p5 = scmp.eq.s32.totalorder %s1803_s30, 1 }
  0x13   : > { %2907 = sst [smem:[#allocation16_spill]] %s2938_s18  ;;  %p2476_p4 = por %p426_p2, %p425_p1 }
  0x14   : > { %s410_s20 = ssub.s32 %s2331_s28, %s2938_s18  ;;  %p1804_p6 = scmp.ge.s32.totalorder %s2335_s29, 1 }
  0x15   : > { %s2908_s1 = scalar_select %p2476_p4, 1, 0 }
  0x16   : > { %p413_p7 = scmp.eq.s32.totalorder %s410_s20, 0  ;;  %p2483_p8 = por %p432_p5, %p431_p3 }
  0x17   : > { %2909 = sst [smem:[#allocation17_spill]] %s2908_s1  ;;  %p439_p9 = scmp.lt.s32.totalorder %s2335_s29, 3 }
  0x18   : > { %s2910_s21 = scalar_select %p2483_p8, 1, 0 }
  0x19   : > { %s2489_s22 = scalar_select %p413_p7, %s2323_s26, %s415_s19  }
  0x1a   : > { %2911 = sst [smem:[#allocation18_spill]] %s2910_s21  ;;  %p2491_p10 = pnand %p1804_p6, %p439_p9 }
  0x1b   : > { %2912 = sst [smem:[#allocation19_spill]] %s2489_s22  ;;  %p2495_p11 = scmp.eq.s32.totalorder %s1802_s0, 0 }
  0x1c   : > { %s2913_s23 = scalar_select %p2491_p10, 1, 0 }
  0x1d   : > { %s2914_s24 = scalar_select %p2495_p11, 1, 0 }
  0x1e   : > { %p2048_p12 = pneg %p2491_p10  ;;  %s2337_s30 = smov [#allocation5]  }
  0x1f   : > { %s475_s20 = sshll.u32 %s2337_s30, 4  ;;  %s2338_s19 = smov [#allocation2]   ;;  %s476_s20 = int_to_ptr.vmem [resolvable:$true] %s475_s20 }
  0x20   : > { %p2503_p13 = pnand %p2495_p11, %p2048_p12  ;;  %s461_s28 = sshll.u32 %s2338_s19, 4  ;;  %s2507_s28 = int_to_ptr.vmem [resolvable:$true] %s461_s28 }
  0x21   : > { %s2916_s6 = sld [smem:[#allocation22_spill]] }
  0x22   : > { %p2517_p1 = pneg %p2503_p13 }
  0x27   : > { %s2165_s26 = scalar_lea.hbm %s2916_s6, 16 }
  0x28   : > { %p2166_p0 = scmp.ne.s32.totalorder %s2916_s6, %s2165_s26  ;;  %p2172_p5 = scmp.lt.u32.totalorder %s2165_s26, %s2916_s6 }
  0x2a   : > { %p2168_p2 = pnand %p2517_p1, %p2166_p0 }
  0x2c   : > { %p2169_p3 = pneg %p2168_p2 }
  0x2e   : > { %p2174_p6 = pnand %p2172_p5, %p2169_p3 }
  0x30   : > { %2177 = shalt.err (!%p2174_p6)
}
  0x31   : > { %s2178_s22 = scalar_lea.vmem %s476_s20, 16  ;;  %s2185_s29 = scalar_lea.vmem %s476_s20, 32 }
  0x32   : > { %p2179_p7 = scmp.ne.s32.totalorder %s476_s20, %s2178_s22  ;;  %p2186_p8 = scmp.lt.s32.totalorder %s476_s20, %s476_s20 }
  0x33   : > { %p2187_p4 = scmp.lt.s32.totalorder %s2185_s29, %s2178_s22 }
  0x34   : > { %p2181_p9 = pnand %p2179_p7, %p2517_p1 }
  0x35   : > { %p2188_p11 = por %p2187_p4, %p2186_p8 }
  0x36   : > { %p2182_p12 = pneg %p2181_p9 }
  0x38   : > { %p2189_p10 = pnand %p2188_p11, %p2182_p12 }
  0x3a   : > { %2192 = shalt.err (!%p2189_p10)
}
  0x3b   : > { %2054 = dma.hbm_to_vmem [thread:$0]  (!%p2503_p13), %s2916_s6, 16, %s476_s20, [#allocation6]  }
  0x3c   : > { %s2193_s19 = scalar_lea.hbm %s2870_s4, 16 }
  0x3d   : > { %p2194_p0 = scmp.ne.s32.totalorder %s2870_s4, %s2193_s19  ;;  %p2200_p8 = scmp.lt.u32.totalorder %s2193_s19, %s2870_s4 }
  0x3f   : > { %p2196_p2 = pnand %p2194_p0, %p2517_p1 }
  0x41   : > { %p2197_p4 = pneg %p2196_p2 }
  0x43   : > { %p2202_p10 = pnand %p2200_p8, %p2197_p4 }
  0x45   : > { %2205 = shalt.err (!%p2202_p10)
}
  0x46   : > { %s2206_s20 = scalar_lea.vmem %s2507_s28, 16  ;;  %s2213_s16 = scalar_lea.vmem %s2507_s28, 32 }
  0x47   : > { %p2207_p11 = scmp.ne.s32.totalorder %s2507_s28, %s2206_s20  ;;  %p2214_p6 = scmp.lt.s32.totalorder %s2507_s28, %s2507_s28 }
  0x48   : > { %p2215_p7 = scmp.lt.s32.totalorder %s2213_s16, %s2206_s20 }
  0x49   : > { %p2209_p3 = pnand %p2207_p11, %p2517_p1 }
  0x4a   : > { %p2216_p9 = por %p2215_p7, %p2214_p6 }
  0x4b   : > { %p2210_p5 = pneg %p2209_p3 }
  0x4d   : > { %p2217_p12 = pnand %p2216_p9, %p2210_p5 }
  0x4f   : > { %2220 = shalt.err (!%p2217_p12)
}
  0x50   : > { %2051 = dma.hbm_to_vmem [thread:$0]  (!%p2503_p13), %s2870_s4, 16, %s2507_s28, [#allocation3]  }
  0x51   : > { %s2339_s0 = smov [#allocation7]   ;;  %s2221_s22 = scalar_lea.hbm %s2874_s8, 16 }
  0x52   : > { %s489_s17 = sshll.u32 %s2339_s0, 4  ;;  %p2222_p0 = scmp.ne.s32.totalorder %s2874_s8, %s2221_s22  ;;  %s490_s17 = int_to_ptr.vmem [resolvable:$true] %s489_s17 }
  0x53   : > { %p2228_p8 = scmp.lt.u32.totalorder %s2221_s22, %s2874_s8 }
  0x54   : > { %p2224_p2 = pnand %p2222_p0, %p2517_p1 }
  0x56   : > { %p2225_p4 = pneg %p2224_p2 }
  0x58   : > { %p2230_p10 = pnand %p2228_p8, %p2225_p4 }
  0x5a   : > { %2233 = shalt.err (!%p2230_p10)
}
  0x5b   : > { %s2234_s28 = scalar_lea.vmem %s490_s17, 16  ;;  %s2241_s1 = scalar_lea.vmem %s490_s17, 32 }
  0x5c   : > { %p2235_p11 = scmp.ne.s32.totalorder %s490_s17, %s2234_s28  ;;  %p2242_p6 = scmp.lt.s32.totalorder %s490_s17, %s490_s17 }
  0x5d   : > { %p2243_p7 = scmp.lt.s32.totalorder %s2241_s1, %s2234_s28 }
  0x5e   : > { %p2237_p3 = pnand %p2235_p11, %p2517_p1 }
  0x5f   : > { %p2244_p9 = por %p2243_p7, %p2242_p6 }
  0x60   : > { %p2238_p5 = pneg %p2237_p3 }
  0x62   : > { %p2245_p12 = pnand %p2244_p9, %p2238_p5 }
  0x64   : > { %2248 = shalt.err (!%p2245_p12)
}
  0x65   : > { %2057 = dma.hbm_to_vmem [thread:$0]  (!%p2503_p13), %s2874_s8, 16, %s490_s17, [#allocation6]  }
  0x66   : > { %p2918_p0 = scmp.ne.s32.totalorder %s2913_s23, 0 }
  0x67   : > { %p2919_p2 = scmp.ne.s32.totalorder (!%p2918_p0), %s2914_s24, 0 }
  0x68   : > { %533 = sbr.rel (%p2918_p0) target bundleno = 3821 (0xeed), region = 88 }
  0x6f   : > { %2302 = dma.done.wait (%p2919_p2), [#allocation3], 16  }
  0x70   : > { %2304 = vsyncadd (%p2919_p2), [#allocation3], 4294967280 }
  0x71   : > { %2306 = dma.done.wait (%p2919_p2), [#allocation6], 32  }
  0x72   : > { %2308 = vsyncadd (%p2919_p2), [#allocation6], 4294967264  ;;  %p592_p1 = scmp.lt.s32.totalorder %s2327_s27, 1  ;;  %s2920_s17 = sld [smem:[#allocation20_spill]]  ;;  %vm600_vm0 = vcmask 261120   ;;  %v2125_v7 = vld [vmem:[%s2869_s3] sm:$0xff]  }
  0x73   : > { %v2340_v8 = vmov 0.0   ;;  %vm2341_vm1 = vmmov 0   ;;  %v2126_v9 = vld [vmem:[%s2869_s3 + $0x8] sm:$0xff]   ;;  %s2921_s28 = sld [smem:[#allocation21_spill]]  ;;  %v1816_v16 = vld [vmem:[%s2868_s2] ss:$0 sm:$0xff] }
  0x74   : > { %s593_s6 = scalar_select %p592_p1, %s2327_s27, 1  ;;  %1910 = vmatprep.subr.bf16.mxu1 %v2340_v8  ;;  %1914 = vmatprep.mubr.msk.bf16.mxu1 %vm2341_vm1, %v2340_v8  ;;  %v2127_v19 = vld [vmem:[%s2871_s5] sm:$0xff]   ;;  %v2128_v21 = vld [vmem:[%s2871_s5 + $0x8] sm:$0xff]   ;;  %vm825_vm2 = vcmask 64512   ;;  %vm887_vm3 = vcmask 1043456  }
  0x75   : > { %1911 = vmatpush3.bf16.msra.mxu1 %v2125_v7  ;;  %1940 = vmatprep.subr.bf16.mxu0 %v2340_v8  ;;  %v2129_v22 = vld [vmem:[%s2873_s7] sm:$0xff]   ;;  %v2130_v23 = vld [vmem:[%s2873_s7 + $0x8] sm:$0xff]   ;;  %s2342_s19 = smov 120   ;;  %s2343_s22 = smov 112  }
  0x76   : > { %s1814_s18 = sshll.u32 %s593_s6, 3  ;;  %1912 = vmatprep.subr.bf16.mxu1 %v2340_v8  ;;  %1942 = vmatprep.mubr.msk.bf16.mxu0 %vm2341_vm1, %v2340_v8  ;;  %v1821_v28 = vld [vmem:[#allocation5] ss:$0 sm:$0xff]  ;;  %v1817_v29 = vld [vmem:[#allocation2] ss:$0 sm:$0xff]  ;;  %s2344_s1 = smov 104  }
  0x77   : > { %v1825_v38 = vld [vmem:[#allocation7] ss:$0 sm:$0xff]  ;;  %s589_s21 = sand.u32 1, %s2319_s25   ;;  %s2922_s30 = sld [smem:[#allocation23_spill]] }
  0x78   : > { %s595_s26 = scalar_lea.vmem %s2920_s17, %s1814_s18  ;;  %s1813_s0 = sshll.u32 %s589_s21, 3 }
  0x79   : > { %v2590_v0 = vld [vmem:[%s595_s26] sm:$0xff]  ;;  %1913 = vmatpush3.bf16.msra.mxu1 %v2126_v9  ;;  %s2923_s23 = sld [smem:[#allocation17_spill]]  ;;  %s1862_s17 = sshll.u32 %s2327_s27, 7 }
  0x7a   : > { %v601_v1 = vsel %vm600_vm0, %v2590_v0, 0.0  ;;  %1918 = vmatprep.subr.bf16.mxu1 %v2340_v8  ;;  %v1815_v14 = vld [vmem:[%s2921_s28] ss:$0 sm:$0xff]  ;;  %s591_s26 = scalar_lea.vmem [#allocation8], %s1813_s0  ;;  %s2924_s29 = sld [smem:[#allocation24_spill]] }
  0x7b   : > { %602 = vadd.xlane.f32.xlu0 %v601_v1  ;;  %s1703_s24 = sshll.u32 %s591_s26, 4  ;;  %s1689_s27 = scalar_lea.sflag [#allocation4], %s589_s21  ;;  %s2820_s24 = int_to_ptr.vmem [resolvable:$true] %s1703_s24 }
  0x7c   : > { %s2249_s28 = scalar_lea.vmem %s2820_s24, 128 }
  0x7d   : > { %p2250_p13 = scmp.ne.s32.totalorder %s2820_s24, %s2249_s28 }
  0x7f   : > { %p2926_p4 = scmp.ne.s32.totalorder %s2923_s23, 0 }
  0x80   : > { %s2925_s20 = smov %s2924_s29  ;;  %s2818_s16 = scalar_lea.hbm %s2924_s29, %s1862_s17 }
  0x81   : > { %p2251_p8 = pnand %p2250_p13, %p2926_p4 }
  0x83   : > { %p2252_p10 = pneg %p2251_p8 }
 0x108   : > { %v603_v2 = vpop.xlane.xlu0 %602 }
 0x109   : > { %v605_v3 = vmul.f32 0.03125, %v603_v2 }
 0x10b   : > { %v606_v4 = vsub.f32 %v2590_v0, %v605_v3 }
 0x10d   : > { %v607_v5 = vmul.f32 %v606_v4, %v606_v4 }
 0x10f   : > { %v608_v6 = vsel %vm600_vm0, %v607_v5, 0.0 }
 0x110   : > { %609 = vadd.xlane.f32.xlu0 %v608_v6 }
 0x19d   : > { %v610_v10 = vpop.xlane.xlu0 %609 }
 0x19e   : > { %v611_v11 = vmul.f32 0.03125, %v610_v10 }
 0x1a0   : > { %v612_v12 = vadd.f32 1e-05, %v611_v11 }
 0x1a2   : > { %2141 = vrsqrt.f32 %v612_v12  ;;  %v1833_v12 = vld [vmem:[%s2875_s9 + $0x4] sm:$0xf] }
 0x1ac   : > { %v2142_v13 = vpop.eup %2141 }
 0x1ad   : > { %v614_v15 = vmul.f32 %v2142_v13, %v606_v4  ;;  %v1053_v13 = vsel %vm887_vm3, %v1833_v12, 0 }
 0x1af   : > { %v621_v17 = vmul.f32 %v1815_v14, %v614_v15 }
 0x1b1   : > { %v628_v18 = vadd.f32 %v1816_v16, %v621_v17 }
 0x1b3   : > { %v629_v20 = vpack.c.bf16 %v628_v18, %v628_v18  ;;  %v932_v18 = vld [vmem:[%s2875_s9] sm:$0xf] }
 0x1b5   : > { %1915 = vmatmul.mubr.msk.bf16.vlgmr.msra.gmra.mrb[0].mxu1 %vm600_vm0, %v629_v20 }
 0x1b6   : > { %1919 = vmatpush3.bf16.msra.mxu1 %v2127_v19  ;;  %1922 = vmatprep.mubr.msk.bf16.mxu1 %vm2341_vm1, %v2340_v8 }
 0x1b7   : > { %1920 = vmatprep.subr.bf16.mxu1 %v2340_v8 }
 0x1ba   : > { %1921 = vmatpush3.bf16.msra.mxu1 %v2128_v21  ;;  %v1099_v21 = vsel %vm887_vm3, %v932_v18, 0 }
 0x1bb   : > { %1926 = vmatprep.subr.bf16.mxu1 %v2340_v8 }
 0x1bd   : > { %1923 = vmatmul.mubr.msk.bf16.vlgmr.msra.gmra.mrb[4].mxu1 %vm600_vm0, %v629_v20 }
 0x1be   : > { %1927 = vmatpush3.bf16.msra.mxu1 %v2129_v22  ;;  %1930 = vmatprep.mubr.msk.bf16.mxu1 %vm2341_vm1, %v2340_v8 }
 0x1bf   : > { %1928 = vmatprep.subr.bf16.mxu1 %v2340_v8 }
 0x1c2   : > { %1929 = vmatpush3.bf16.msra.mxu1 %v2130_v23 }
 0x1c3   : > { %1934 = vmatprep.subr.bf16.mxu1 %v2340_v8 }
 0x1c5   : > { %1931 = vmatmul.mubr.msk.bf16.vlgmr.msra.gmra.mrb[8].mxu1 %vm600_vm0, %v629_v20 }
 0x1c6   : > { %1936 = vmatprep.mubr.msk.bf16.mxu1 %vm2341_vm1, %v2340_v8 }
 0x288   : > { %v690_v24 = vpop.f32.mrb[0].mxu1 }
 0x289   : > { %v1916_v25 = vpop.f32.mrb[1].mxu1  ;;  %v691_v34 = vadd.f32 %v1817_v29, %v690_v24 }
 0x28a   : > { %v693_v26 = vpop.f32.mrb[2].mxu1 }
 0x28b   : > { %v1917_v27 = vpop.f32.mrb[3].mxu1  ;;  %v2647_v39 = vpack.c.bf16 %v691_v34, %v691_v34 }
 0x290   : > { %v754_v30 = vpop.f32.mrb[4].mxu1 }
 0x291   : > { %v755_v31 = vadd.f32 %v1821_v28, %v754_v30  ;;  %v1924_v32 = vpop.f32.mrb[5].mxu1 }
 0x292   : > { %v757_v33 = vpop.f32.mrb[6].mxu1 }
 0x293   : > { %v2641_v35 = vpack.c.bf16 %v755_v31, %v755_v31  ;;  %v1925_v36 = vpop.f32.mrb[7].mxu1 }
 0x295   : > { %937 = vrot.lane.b32.xlu1 %v2641_v35, %s2342_s19  ;;  %v830_v37 = vsel %vm825_vm2, %v2641_v35, 0 }
 0x296   : > { %1935 = vmatpush3.bf16.xpose.msra.mxu1 %v830_v37 }
 0x297   : > { %1946 = vmatprep.subr.bf16.mxu1 %v2340_v8 }
 0x298   : > { %v818_v40 = vpop.f32.mrb[8].mxu1 }
 0x299   : > { %v819_v41 = vadd.f32 %v1825_v38, %v818_v40  ;;  %934 = vrot.lane.b32.xlu1 %v2647_v39, %s2342_s19  ;;  %v1932_v42 = vpop.f32.mrb[9].mxu1 }
 0x29a   : > { %v821_v43 = vpop.f32.mrb[10].mxu1 }
 0x29b   : > { %v2652_v44 = vpack.c.bf16 %v819_v41, %v819_v41  ;;  %v1933_v45 = vpop.f32.mrb[11].mxu1 }
 0x29d   : > { %1937 = vmatmul.mubr.msk.bf16.vlgmr.msra.gmra.mrb[12].mxu1 %vm825_vm2, %v2647_v39  ;;  %v889_v46 = vsel %vm887_vm3, %v2652_v44, 0 }
 0x29e   : > { %1941 = vmatpush3.bf16.msra.mxu0 %v889_v46  ;;  %1948 = vmatprep.mubr.msk.bf16.mxu1 %vm2341_vm1, %v2340_v8 }
 0x29f   : > { %1952 = vmatprep.subr.bf16.mxu0 %v2340_v8 }
 0x307   : > { %v938_v47 = vpop.permute.xlu1 %937 }
 0x308   : > { %v943_v48 = vsel %vm825_vm2, %v938_v47, 0 }
 0x309   : > { %1947 = vmatpush3.bf16.xpose.msra.mxu1 %v943_v48 }
 0x30a   : > { %1958 = vmatprep.subr.bf16.mxu1 %v2340_v8 }
 0x30b   : > { %v935_v49 = vpop.permute.xlu1 %934 }
 0x310   : > { %1949 = vmatmul.mubr.msk.bf16.vlgmr.msra.gmra.mrb[16].mxu1 %vm825_vm2, %v935_v49 }
 0x311   : > { %1960 = vmatprep.mubr.msk.bf16.mxu1 %vm2341_vm1, %v2340_v8  ;;  %1959 = vmatpush3.bf16.msra.mxu1 %v1053_v13 }
 0x312   : > { %1970 = vmatprep.subr.bf16.mxu1 %v2340_v8 }
 0x370   : > { %v866_v50 = vpop.f32.mrb[12].mxu1 }
 0x371   : > { %v1938_v51 = vpop.f32.mrb[13].mxu1  ;;  %v872_v52 = vsel %vm825_vm2, %v866_v50, -inf }
 0x372   : > { %873 = vmax.xlane.f32.xlu0 %v872_v52  ;;  %v869_v53 = vpop.f32.mrb[14].mxu1 }
 0x373   : > { %v1939_v54 = vpop.f32.mrb[15].mxu1 }
 0x3e3   : > { %v979_v55 = vpop.f32.mrb[16].mxu1 }
 0x3e4   : > { %v1950_v56 = vpop.f32.mrb[17].mxu1  ;;  %v985_v57 = vsel %vm825_vm2, %v979_v55, -inf }
 0x3e5   : > { %986 = vmax.xlane.f32.xlu1 %v985_v57  ;;  %v982_v58 = vpop.f32.mrb[18].mxu1 }
 0x3e6   : > { %v1951_v59 = vpop.f32.mrb[19].mxu1 }
 0x3f6   : > { %1141 = vrot.lane.b32.xlu1 %v2647_v39, %s2343_s22 }
 0x3ff   : > { %v874_v60 = vpop.xlane.xlu0 %873 }
 0x400   : > { %v875_v61 = vsub.f32 %v866_v50, %v874_v60 }
 0x402   : > { %v876_v62 = vmul.f32 1.442695, %v875_v61 }
 0x404   : > { %2143 = vpow2.f32 %v876_v62 }
 0x40e   : > { %v2144_v63 = vpop.eup %2143 }
 0x40f   : > { %v878_v1 = vsel %vm825_vm2, %v2144_v63, 0.0 }
 0x410   : > { %879 = vadd.xlane.f32.xlu0 %v878_v1 }
 0x472   : > { %v987_v2 = vpop.xlane.xlu1 %986 }
 0x473   : > { %v988_v3 = vsub.f32 %v979_v55, %v987_v2 }
 0x475   : > { %v989_v4 = vmul.f32 1.442695, %v988_v3 }
 0x476   : > { %v1142_v34 = vpop.permute.xlu1 %1141 }
 0x477   : > { %2145 = vpow2.f32 %v989_v4 }
 0x481   : > { %v2146_v5 = vpop.eup %2145 }
 0x482   : > { %v991_v6 = vsel %vm825_vm2, %v2146_v5, 0.0 }
 0x483   : > { %992 = vadd.xlane.f32.xlu0 %v991_v6 }
 0x499   : > { %998 = vrot.lane.b32.xlu0 %v2652_v44, %s2342_s19 }
 0x49d   : > { %v880_v7 = vpop.xlane.xlu0 %879  ;;  %1143 = vrot.lane.b32.xlu0 %v2641_v35, %s2343_s22 }
 0x49e   : > { %2147 = vrcp.f32 %v880_v7 }
 0x4a8   : > { %v2148_v9 = vpop.eup %2147 }
 0x4a9   : > { %v882_v10 = vmul.f32 %v2148_v9, %v2144_v63 }
 0x4ab   : > { %v883_v11 = vpack.c.bf16 %v882_v10, %v882_v10 }
 0x4ad   : > { %1943 = vmatmul.mubr.msk.bf16.vlgmr.msra.gmra.mrb[0].mxu0 %vm825_vm2, %v883_v11 }
 0x4ae   : > { %1954 = vmatprep.mubr.msk.bf16.mxu0 %vm2341_vm1, %v2340_v8 }
 0x510   : > { %v993_v14 = vpop.xlane.xlu0 %992 }
 0x511   : > { %2149 = vrcp.f32 %v993_v14 }
 0x514   : > { %v999_v15 = vpop.permute.xlu0 %998 }
 0x515   : > { %v1004_v16 = vsel %vm887_vm3, %v999_v15, 0 }
 0x516   : > { %1953 = vmatpush3.bf16.msra.mxu0 %v1004_v16 }
 0x517   : > { %1964 = vmatprep.subr.bf16.mxu0 %v2340_v8 }
 0x518   : > { %v1144_v27 = vpop.permute.xlu0 %1143 }
 0x519   : > { %v1149_v32 = vsel %vm825_vm2, %v1144_v27, 0 }
 0x51b   : > { %v2150_v17 = vpop.eup %2149 }
 0x51c   : > { %v995_v19 = vmul.f32 %v2150_v17, %v2146_v5 }
 0x51e   : > { %v996_v20 = vpack.c.bf16 %v995_v19, %v995_v19 }
 0x520   : > { %1955 = vmatmul.mubr.msk.bf16.vlgmr.msra.gmra.mrb[4].mxu0 %vm825_vm2, %v996_v20 }
 0x521   : > { %1965 = vmatpush3.bf16.msra.mxu0 %v1099_v21  ;;  %1966 = vmatprep.mubr.msk.bf16.mxu0 %vm2341_vm1, %v2340_v8  ;;  %v1842_v21 = vld [vmem:[%s2875_s9 + $0xc] sm:$0xf] }
 0x522   : > { %1976 = vmatprep.subr.bf16.mxu0 %v2340_v8 }
 0x580   : > { %v925_v22 = vpop.f32.mrb[0].mxu0 }
 0x581   : > { %v931_v23 = vpack.c.bf16 %v925_v22, %v925_v22  ;;  %v1944_v24 = vpop.f32.mrb[1].mxu0 }
 0x582   : > { %v928_v25 = vpop.f32.mrb[2].mxu0 }
 0x583   : > { %v1945_v26 = vpop.f32.mrb[3].mxu0  ;;  %1967 = vmatmul.mubr.msk.bf16.vlgmr.msra.gmra.mrb[8].mxu0 %vm825_vm2, %v931_v23 }
 0x584   : > { %1978 = vmatprep.mubr.msk.bf16.mxu0 %vm2341_vm1, %v2340_v8 }
 0x5f3   : > { %v1040_v28 = vpop.f32.mrb[4].mxu0 }
 0x5f4   : > { %v1046_v29 = vpack.c.bf16 %v1040_v28, %v1040_v28  ;;  %v1956_v30 = vpop.f32.mrb[5].mxu0 }
 0x5f5   : > { %v1043_v31 = vpop.f32.mrb[6].mxu0 }
 0x5f6   : > { %v1957_v33 = vpop.f32.mrb[7].mxu0  ;;  %1961 = vmatmul.mubr.msk.bf16.vlgmr.msra.gmra.mrb[20].mxu1 %vm825_vm2, %v1046_v29 }
 0x5f7   : > { %1971 = vmatpush3.bf16.xpose.msra.mxu1 %v1149_v32  ;;  %1972 = vmatprep.mubr.msk.bf16.mxu1 %vm2341_vm1, %v2340_v8 }
 0x5f8   : > { %1982 = vmatprep.subr.bf16.mxu1 %v2340_v8 }
 0x5fe   : > { %1973 = vmatmul.mubr.msk.bf16.vlgmr.msra.gmra.mrb[24].mxu1 %vm825_vm2, %v1142_v34 }
 0x5ff   : > { %1984 = vmatprep.mubr.msk.bf16.mxu1 %vm2341_vm1, %v2340_v8 }
 0x656   : > { %v1135_v36 = vpop.f32.mrb[8].mxu0 }
 0x657   : > { %v1968_v37 = vpop.f32.mrb[9].mxu0 }
 0x658   : > { %v1138_v38 = vpop.f32.mrb[10].mxu0 }
 0x659   : > { %v1969_v40 = vpop.f32.mrb[11].mxu0 }
 0x6c9   : > { %v1089_v41 = vpop.f32.mrb[20].mxu1 }
 0x6ca   : > { %v2705_v42 = vadd.f32 %v1135_v36, %v1089_v41  ;;  %v1962_v43 = vpop.f32.mrb[21].mxu1  ;;  %v1844_v41 = vld [vmem:[%s2876_s10] ss:$0 sm:$0xff] }
 0x6cb   : > { %v1092_v45 = vpop.f32.mrb[22].mxu1 }
 0x6cc   : > { %v1963_v46 = vpop.f32.mrb[23].mxu1 }
 0x6d1   : > { %v1185_v47 = vpop.f32.mrb[24].mxu1 }
 0x6d2   : > { %v1974_v48 = vpop.f32.mrb[25].mxu1  ;;  %v1191_v49 = vsel %vm825_vm2, %v1185_v47, -inf }
 0x6d3   : > { %1192 = vmax.xlane.f32.xlu0 %v1191_v49  ;;  %v1188_v50 = vpop.f32.mrb[26].mxu1 }
 0x6d4   : > { %v1975_v51 = vpop.f32.mrb[27].mxu1 }
 0x6e9   : > { %1203 = vrot.lane.b32.xlu0 %v2652_v44, %s2343_s22 }
 0x6ed   : > { %1301 = vrot.lane.b32.xlu0 %v2647_v39, %s2344_s1 }
 0x760   : > { %v1193_v52 = vpop.xlane.xlu0 %1192 }
 0x761   : > { %v1194_v53 = vsub.f32 %v1185_v47, %v1193_v52 }
 0x763   : > { %v1195_v54 = vmul.f32 1.442695, %v1194_v53  ;;  %v2131_v53 = vld [vmem:[%s2879_s13] sm:$0xff]  }
 0x764   : > { %v1204_v55 = vpop.permute.xlu0 %1203 }
 0x765   : > { %2151 = vpow2.f32 %v1195_v54  ;;  %v1209_v56 = vsel %vm887_vm3, %v1204_v55, 0 }
 0x766   : > { %1977 = vmatpush3.bf16.msra.mxu0 %v1209_v56 }
 0x767   : > { %1988 = vmatprep.subr.bf16.mxu0 %v2340_v8 }
 0x768   : > { %v1302_v1 = vpop.permute.xlu0 %1301 }
 0x76f   : > { %v2152_v57 = vpop.eup %2151 }
 0x770   : > { %v1197_v58 = vsel %vm825_vm2, %v2152_v57, 0.0 }
 0x771   : > { %1198 = vadd.xlane.f32.xlu1 %v1197_v58  ;;  %v1845_v58 = vld [vmem:[%s2877_s11] ss:$0 sm:$0xff] }
 0x782   : > { %1303 = vrot.lane.b32.xlu1 %v2641_v35, %s2344_s1  ;;  %v1838_v35 = vld [vmem:[%s2875_s9 + $0x8] sm:$0xf] }
 0x783   : > { %v1258_v2 = vsel %vm887_vm3, %v1838_v35, 0  ;;  %v2135_v35 = vld [vmem:[%s2881_s15 + $0x10] sm:$0xff]  }
 0x784   : > { %1983 = vmatpush3.bf16.msra.mxu1 %v1258_v2  ;;  %v2136_v2 = vld [vmem:[%s2881_s15 + $0x18] sm:$0xff]  }
 0x785   : > { %1994 = vmatprep.subr.bf16.mxu1 %v2340_v8 }
 0x7fe   : > { %v1199_v59 = vpop.xlane.xlu1 %1198 }
 0x7ff   : > { %2153 = vrcp.f32 %v1199_v59 }
 0x802   : > { %v1304_v61 = vpop.permute.xlu1 %1303 }
 0x803   : > { %v1309_v63 = vsel %vm825_vm2, %v1304_v61, 0 }
 0x809   : > { %v2154_v39 = vpop.eup %2153 }
 0x80a   : > { %v1201_v60 = vmul.f32 %v2154_v39, %v2152_v57  ;;  %v1846_v39 = vld [vmem:[%s2878_s12] ss:$0 sm:$0xff] }
 0x80c   : > { %v1202_v62 = vpack.c.bf16 %v1201_v60, %v1201_v60 }
 0x80e   : > { %1979 = vmatmul.mubr.msk.bf16.vlgmr.msra.gmra.mrb[12].mxu0 %vm825_vm2, %v1202_v62 }
 0x80f   : > { %1989 = vmatpush3.bf16.xpose.msra.mxu0 %v1309_v63  ;;  %1990 = vmatprep.mubr.msk.bf16.mxu0 %vm2341_vm1, %v2340_v8  ;;  %v2133_v63 = vld [vmem:[%s2881_s15] sm:$0xff]  }
 0x810   : > { %2000 = vmatprep.subr.bf16.mxu0 %v2340_v8 }
 0x816   : > { %1991 = vmatmul.mubr.msk.bf16.vlgmr.msra.gmra.mrb[16].mxu0 %vm825_vm2, %v1302_v1  ;;  %v2134_v1 = vld [vmem:[%s2881_s15 + $0x8] sm:$0xff]  }
 0x817   : > { %2002 = vmatprep.mubr.msk.bf16.mxu0 %vm2341_vm1, %v2340_v8 }
 0x8e1   : > { %v1245_v3 = vpop.f32.mrb[12].mxu0 }
 0x8e2   : > { %v1251_v4 = vpack.c.bf16 %v1245_v3, %v1245_v3  ;;  %v1980_v5 = vpop.f32.mrb[13].mxu0  ;;  %v2137_v3 = vld [vmem:[%s2881_s15 + $0x20] sm:$0xff]  }
 0x8e3   : > { %v1248_v6 = vpop.f32.mrb[14].mxu0  ;;  %v2139_v5 = vld [vmem:[%s2881_s15 + $0x30] sm:$0xff]  }
 0x8e4   : > { %v1981_v7 = vpop.f32.mrb[15].mxu0  ;;  %1985 = vmatmul.mubr.msk.bf16.vlgmr.msra.gmra.mrb[28].mxu1 %vm825_vm2, %v1251_v4  ;;  %v2138_v4 = vld [vmem:[%s2881_s15 + $0x28] sm:$0xff]   ;;  %v2140_v6 = vld [vmem:[%s2881_s15 + $0x38] sm:$0xff]  }
 0x8e5   : > { %1996 = vmatprep.mubr.msk.bf16.mxu1 %vm2341_vm1, %v2340_v8  ;;  %v1847_v7 = vld [vmem:[%s2880_s14] ss:$0 sm:$0xff] }
 0x8e9   : > { %v1345_v9 = vpop.f32.mrb[16].mxu0 }
 0x8ea   : > { %v1992_v10 = vpop.f32.mrb[17].mxu0  ;;  %v1351_v11 = vsel %vm825_vm2, %v1345_v9, -inf }
 0x8eb   : > { %1352 = vmax.xlane.f32.xlu0 %v1351_v11  ;;  %v1348_v12 = vpop.f32.mrb[18].mxu0 }
 0x8ec   : > { %v1993_v13 = vpop.f32.mrb[19].mxu0 }
 0x901   : > { %1363 = vrot.lane.b32.xlu0 %v2652_v44, %s2344_s1  ;;  %v1418_v44 = vsel %vm887_vm3, %v1842_v21, 0  ;;  %s2345_s1 = smov [#allocation8]  }
 0x902   : > { %2001 = vmatpush3.bf16.msra.mxu0 %v1418_v44  ;;  %s2253_s0 = sshll.u32 %s2345_s1, 4  ;;  %s2254_s0 = int_to_ptr.vmem [resolvable:$false] %s2253_s0 }
 0x903   : > { %2014 = vmatprep.subr.bf16.mxu0 %v2340_v8  ;;  %s2255_s6 = scalar_lea.vmem %s2254_s0, 256  ;;  %p2256_p11 = scmp.lt.s32.totalorder %s2820_s24, %s2254_s0 }
 0x904   : > { %p2257_p3 = scmp.lt.s32.totalorder %s2255_s6, %s2249_s28 }
 0x906   : > { %p2258_p5 = por %p2257_p3, %p2256_p11 }
 0x908   : > { %p2259_p6 = pnand %p2258_p5, %p2252_p10 }
 0x978   : > { %v1353_v14 = vpop.xlane.xlu0 %1352 }
 0x979   : > { %v1354_v15 = vsub.f32 %v1345_v9, %v1353_v14 }
 0x97b   : > { %v1355_v16 = vmul.f32 1.442695, %v1354_v15 }
 0x97c   : > { %v1364_v17 = vpop.permute.xlu0 %1363 }
 0x97d   : > { %2155 = vpow2.f32 %v1355_v16  ;;  %v1369_v18 = vsel %vm887_vm3, %v1364_v17, 0 }
 0x97e   : > { %1995 = vmatpush3.bf16.msra.mxu1 %v1369_v18 }
 0x97f   : > { %2006 = vmatprep.subr.bf16.mxu1 %v2340_v8 }
 0x987   : > { %v2156_v19 = vpop.eup %2155 }
 0x988   : > { %v1357_v20 = vsel %vm825_vm2, %v2156_v19, 0.0 }
 0x989   : > { %1358 = vadd.xlane.f32.xlu1 %v1357_v20  ;;  %v1852_v20 = vld [vmem:[%s2922_s30] ss:$0 sm:$0xff] }
 0x9b7   : > { %v1294_v22 = vpop.f32.mrb[28].mxu1 }
 0x9b8   : > { %v1300_v23 = vadd.f32 %v1294_v22, %v2705_v42  ;;  %v1986_v24 = vpop.f32.mrb[29].mxu1 }
 0x9b9   : > { %v1297_v25 = vpop.f32.mrb[30].mxu1 }
 0x9ba   : > { %v1987_v26 = vpop.f32.mrb[31].mxu1 }
 0xa16   : > { %v1359_v27 = vpop.xlane.xlu1 %1358 }
 0xa17   : > { %2157 = vrcp.f32 %v1359_v27 }
 0xa21   : > { %v2158_v28 = vpop.eup %2157 }
 0xa22   : > { %v1361_v29 = vmul.f32 %v2158_v28, %v2156_v19 }
 0xa24   : > { %v1362_v30 = vpack.c.bf16 %v1361_v29, %v1361_v29 }
 0xa26   : > { %1997 = vmatmul.mubr.msk.bf16.vlgmr.msra.gmra.mrb[32].mxu1 %vm825_vm2, %v1362_v30 }
 0xa27   : > { %2010 = vmatprep.mubr.msk.bf16.mxu1 %vm2341_vm1, %v2340_v8  ;;  %2007 = vmatpush3.bf16.msra.mxu1 %v2131_v53 }
 0xa28   : > { %2008 = vmatprep.subr.bf16.mxu1 %v2340_v8 }
 0xaf9   : > { %v1405_v31 = vpop.f32.mrb[32].mxu1 }
 0xafa   : > { %v1411_v32 = vpack.c.bf16 %v1405_v31, %v1405_v31  ;;  %v1998_v33 = vpop.f32.mrb[33].mxu1 }
 0xafb   : > { %v1408_v34 = vpop.f32.mrb[34].mxu1 }
 0xafc   : > { %v1999_v36 = vpop.f32.mrb[35].mxu1  ;;  %2003 = vmatmul.mubr.msk.bf16.vlgmr.msra.gmra.mrb[20].mxu0 %vm825_vm2, %v1411_v32 }
 0xafd   : > { %2030 = vmatprep.mubr.msk.bf16.mxu0 %vm2341_vm1, %v2340_v8  ;;  %2015 = vmatpush3.bf16.msra.mxu0 %v2133_v63 }
 0xafe   : > { %2016 = vmatprep.subr.bf16.mxu0 %v2340_v8 }
 0xb01   : > { %2017 = vmatpush3.bf16.msra.mxu0 %v2134_v1 }
 0xb02   : > { %2018 = vmatprep.subr.bf16.mxu0 %v2340_v8 }
 0xb05   : > { %2019 = vmatpush3.bf16.msra.mxu0 %v2135_v35 }
 0xb06   : > { %2020 = vmatprep.subr.bf16.mxu0 %v2340_v8 }
 0xb09   : > { %2021 = vmatpush3.bf16.msra.mxu0 %v2136_v2 }
 0xb0a   : > { %2022 = vmatprep.subr.bf16.mxu0 %v2340_v8 }
 0xb0d   : > { %2023 = vmatpush3.bf16.msra.mxu0 %v2137_v3 }
 0xb0e   : > { %2024 = vmatprep.subr.bf16.mxu0 %v2340_v8 }
 0xb11   : > { %2025 = vmatpush3.bf16.msra.mxu0 %v2138_v4 }
 0xb12   : > { %2026 = vmatprep.subr.bf16.mxu0 %v2340_v8 }
 0xb15   : > { %2027 = vmatpush3.bf16.msra.mxu0 %v2139_v5 }
 0xb16   : > { %2028 = vmatprep.subr.bf16.mxu0 %v2340_v8 }
 0xb19   : > { %2029 = vmatpush3.bf16.msra.mxu0 %v2140_v6 }
 0xbcf   : > { %v1454_v37 = vpop.f32.mrb[20].mxu0 }
 0xbd0   : > { %v1460_v38 = vadd.f32 %v1454_v37, %v1300_v23  ;;  %v2004_v40 = vpop.f32.mrb[21].mxu0 }
 0xbd1   : > { %v1457_v42 = vpop.f32.mrb[22].mxu0 }
 0xbd2   : > { %v1461_v43 = vadd.f32 %v1460_v38, %v2590_v0  ;;  %v2005_v45 = vpop.f32.mrb[23].mxu0  ;;  %v2132_v0 = vld [vmem:[%s2879_s13 + $0x8] sm:$0xff]  }
 0xbd3   : > { %2009 = vmatpush3.bf16.msra.mxu1 %v2132_v0 }
 0xbd4   : > { %v2755_v46 = vadd.f32 %v1844_v41, %v1461_v43 }
 0xbd6   : > { %v1472_v47 = vsel %vm600_vm0, %v2755_v46, 0.0 }
 0xbd7   : > { %1473 = vadd.xlane.f32.xlu1 %v1472_v47 }
 0xc64   : > { %v1474_v48 = vpop.xlane.xlu1 %1473 }
 0xc65   : > { %v1475_v49 = vmul.f32 0.03125, %v1474_v48 }
 0xc67   : > { %v1476_v50 = vsub.f32 %v2755_v46, %v1475_v49 }
 0xc69   : > { %v1477_v51 = vmul.f32 %v1476_v50, %v1476_v50 }
 0xc6b   : > { %v1478_v52 = vsel %vm600_vm0, %v1477_v51, 0.0 }
 0xc6c   : > { %1479 = vadd.xlane.f32.xlu1 %v1478_v52 }
 0xcf9   : > { %v1480_v54 = vpop.xlane.xlu1 %1479 }
 0xcfa   : > { %v1481_v55 = vmul.f32 0.03125, %v1480_v54 }
 0xcfc   : > { %v1482_v56 = vadd.f32 1e-05, %v1481_v55 }
 0xcfe   : > { %2159 = vrsqrt.f32 %v1482_v56 }
 0xd08   : > { %v2160_v57 = vpop.eup %2159 }
 0xd09   : > { %v1484_v59 = vmul.f32 %v2160_v57, %v1476_v50 }
 0xd0b   : > { %v1491_v60 = vmul.f32 %v1845_v58, %v1484_v59 }
 0xd0d   : > { %v1498_v61 = vadd.f32 %v1846_v39, %v1491_v60 }
 0xd0f   : > { %v1499_v62 = vpack.c.bf16 %v1498_v61, %v1498_v61 }
 0xd11   : > { %2011 = vmatmul.mubr.msk.bf16.vlgmr.msra.gmra.mrb[36].mxu1 %vm600_vm0, %v1499_v62 }
 0xde4   : > { %v1560_v9 = vpop.f32.mrb[36].mxu1 }
 0xde5   : > { %v1561_v10 = vadd.f32 %v1847_v7, %v1560_v9  ;;  %v2012_v11 = vpop.f32.mrb[37].mxu1 }
 0xde6   : > { %v1563_v12 = vpop.f32.mrb[38].mxu1 }
 0xde7   : > { %v1851_v13 = vmul.f32 -1.702, %v1561_v10  ;;  %v2013_v14 = vpop.f32.mrb[39].mxu1 }
 0xde9   : > { %v1568_v15 = vmul.f32 1.442695, %v1851_v13 }
 0xdeb   : > { %2161 = vpow2.f32 %v1568_v15 }
 0xdf5   : > { %v2162_v8 = vpop.eup %2161 }
 0xdf6   : > { %v1570_v16 = vadd.f32 1.0, %v2162_v8 }
 0xdf8   : > { %2163 = vrcp.f32 %v1570_v16 }
 0xe02   : > { %v2164_v17 = vpop.eup %2163 }
 0xe03   : > { %v1573_v18 = vmul.f32 %v2164_v17, %v1561_v10 }
 0xe05   : > { %v1574_v19 = vpack.c.bf16 %v1573_v18, %v1573_v18 }
 0xe07   : > { %2031 = vmatmul.mubr.bf16.vlgmr.msra.gmra.mrb[24].mxu0 %v1574_v19 }
 0xeda   : > { %v1680_v21 = vpop.f32.mrb[24].mxu0 }
 0xedb   : > { %v1681_v44 = vadd.f32 %v1852_v20, %v1680_v21  ;;  %v2032_v22 = vpop.f32.mrb[25].mxu0 }
 0xedc   : > { %v1683_v23 = vpop.f32.mrb[26].mxu0 }
 0xedd   : > { %v1686_v24 = vadd.f32 %v1681_v44, %v2755_v46  ;;  %v2033_v25 = vpop.f32.mrb[27].mxu0 }
 0xedf   : > { %1687 = vst.msk [vmem:[%s591_s26] sm:$0xff] %vm600_vm0, %v1686_v24 }
 0xee0   : > { %2262 = shalt.err (!%p2259_p6)
}
 0xee1   : > { %s2263_s21 = scalar_lea.hbm %s2818_s16, 128  ;;  %s2267_s17 = scalar_lea.hbm %s2925_s20, 256 }
 0xee2   : > { %p2264_p7 = scmp.ne.s32.totalorder %s2818_s16, %s2263_s21  ;;  %p2268_p0 = scmp.lt.u32.totalorder %s2818_s16, %s2925_s20 }
 0xee3   : > { %p2269_p2 = scmp.lt.u32.totalorder %s2267_s17, %s2263_s21  ;;  %p2271_p13 = scmp.lt.u32.totalorder %s2263_s21, %s2818_s16 }
 0xee4   : > { %p2265_p9 = pnand %p2264_p7, %p2926_p4 }
 0xee5   : > { %p2270_p1 = por %p2269_p2, %p2268_p0 }
 0xee6   : > { %p2266_p12 = pneg %p2265_p9 }
 0xee7   : > { %p2272_p8 = por %p2271_p13, %p2270_p1 }
 0xee9   : > { %p2273_p10 = pnand %p2272_p8, %p2266_p12 }
 0xeeb   : > { %2276 = shalt.err (!%p2273_p10)
}
 0xeec   : > { %2046 = dma.vmem_to_hbm [thread:$0]  (%p2926_p4), %s2820_s24, 128, %s2818_s16, %s1689_s27  }
 0xeed PF: > { %s2927_s22 = sld [smem:[#allocation15_spill]]  ;;  %s2928_s29 = sld [smem:[#allocation12_spill]] }
 0xeee   : > { %s2929_s28 = sld [smem:[#allocation18_spill]] }
 0xef3   : > { %p2068_p11 = scmp.ge.s32.totalorder %s2927_s22, 2  ;;  %s1715_s1 = sand.u32 1, %s2928_s29  }
 0xef4   : > { %p2930_p3 = scmp.ne.s32.totalorder %s2929_s28, 0  ;;  %s1716_s0 = scalar_lea.sflag [#allocation4], %s1715_s1 }
 0xef6   : > { %p2059_p5 = pnand %p2068_p11, %p2930_p3 }
 0xef8   : > { %2310 = dma.done.wait (!%p2059_p5), %s1716_s0, 128  }
 0xef9   : > { %2312 = vsyncadd (!%p2059_p5), %s1716_s0, 4294967168  ;;  %s32_s29 = sadd.s32 1, %s2927_s22   ;;  %s2931_s6 = sld [smem:[#allocation13_spill]] }
 0xefa   : > { %p29_p6 = scmp.ge.s32.totalorder %s32_s29, 4   ;;  %s2932_s26 = sld [smem:[#allocation19_spill]] }
 0xefb   : > { %s2933_s27 = sld [smem:[#allocation14_spill]]  ;;  %s2934_s28 = sld [smem:[#allocation16_spill]] }
 0xefc   : > { %s2935_s24 = smov %s2319_s25  ;;  %31 = sbr.rel (!%p29_p6) target bundleno = 12 (0xc), region = 139 }
 0xeff   : > { %s2936_s25 = smov %s2931_s6 }
 0xf03   :  { %1721 = vsyncpa [#allocation3], 1 }
 0xf04   :  { %1723 = vsyncpa [#allocation3 + $0x1], 1 }
 0xf05   :  { %1724 = vsyncpa [#allocation6], 1 }
 0xf06   :  { %1725 = vsyncpa [#allocation4], 1 }
 0xf07   :  { %1727 = vsyncpa [#allocation4 + $0x1], 1 }

// kernel: tpu_custom_call.1
= control target key start
LH: loop header
LB: loop body
LE: loop exit
PB: predicated region body
PF: predicated region fallthrough
CT: control target
= control target key end

     0   :  { %s2866_s0 = inlined_call_operand.vmem [shape: f32[2,8,32], index: 0, kind: input, shape index: {}]   ;;  %s2867_s1 = inlined_call_operand.vmem [shape: f32[1,32], index: 1, kind: input, shape index: {}]   ;;  %s2868_s2 = inlined_call_operand.vmem [shape: f32[1,32], index: 2, kind: input, shape index: {}]   ;;  %s2869_s3 = inlined_call_operand.vmem [shape: bf16[32,32], index: 3, kind: input, shape index: {}]   ;;  %s2870_s4 = inlined_call_operand.hbm [shape: f32[1,32], index: 4, kind: input, shape index: {}]   ;;  %s2871_s5 = inlined_call_operand.vmem [shape: bf16[32,32], index: 5, kind: input, shape index: {}]   ;;  %s2872_s6 = inlined_call_operand.hbm [shape: f32[1,32], index: 6, kind: input, shape index: {}]   ;;  %s2873_s7 = inlined_call_operand.vmem [shape: bf16[32,32], index: 7, kind: input, shape index: {}]   ;;  %s2874_s8 = inlined_call_operand.hbm [shape: f32[1,32], index: 8, kind: input, shape index: {}]   ;;  %s2875_s9 = inlined_call_operand.vmem [shape: bf16[4,8,32], index: 9, kind: input, shape index: {}]   ;;  %s2876_s10 = inlined_call_operand.vmem [shape: f32[1,32], index: 10, kind: input, shape index: {}]   ;;  %s2877_s11 = inlined_call_operand.vmem [shape: f32[1,32], index: 11, kind: input, shape index: {}]   ;;  %s2878_s12 = inlined_call_operand.vmem [shape: f32[1,32], index: 12, kind: input, shape index: {}]   ;;  %s2879_s13 = inlined_call_operand.vmem [shape: bf16[32,128], index: 13, kind: input, shape index: {}]   ;;  %s2880_s14 = inlined_call_operand.vmem [shape: f32[1,128], index: 14, kind: input, shape index: {}]   ;;  %s2881_s15 = inlined_call_operand.vmem [shape: bf16[128,32], index: 15, kind: input, shape index: {}]   ;;  %s2882_s16 = inlined_call_operand.vmem [shape: f32[1,32], index: 16, kind: input, shape index: {}]   ;;  %s2883_s17 = inlined_call_operand.hbm [shape: f32[2,8,32], index: 17, kind: output, shape index: {}]  }
   0x1   :  { %2898 = sst [smem:[#allocation20_spill]] %s2866_s0 }
   0x2   :  { %2899 = sst [smem:[#allocation21_spill]] %s2867_s1 }
   0x3   :  { %2900 = sst [smem:[#allocation22_spill]] %s2872_s6 }
   0x4   :  { %2901 = sst [smem:[#allocation23_spill]] %s2882_s16 }
   0x5   :  { %2902 = sst [smem:[#allocation24_spill]] %s2883_s17 }
   0x6   :  { %22 = vsyncpa [#allocation3], 0 }
   0x7   :  { %23 = vsyncpa [#allocation6], 0 }
   0x8   :  { %24 = vsyncpa [#allocation4], 0 }
   0x9   :  { %26 = vsyncpa [#allocation4 + $0x1], 0  ;;  %s2436_s24 = smov 0   ;;  %s2438_s25 = smov 0  }
   0xa   :  { %s2440_s26 = smov 0   ;;  %s2442_s27 = smov 0  }
   0xb   :  { %s2444_s28 = smov 0   ;;  %s2446_s29 = smov 0  }
   0xc LB: > { %2903 = sst [smem:[#allocation12_spill]] %s2315_s24  ;;  %s1802_s0 = sadd.s32 4294967295, %s2335_s29   ;;  %s2335_s29 = sphi %s2446_s29, %s32_s29   ;;  %s2331_s28 = sphi %s2444_s28, %s2934_s28   ;;  %s2327_s27 = sphi %s2442_s27, %s2933_s27   ;;  %s2323_s26 = sphi %s2440_s26, %s2932_s26   ;;  %s2319_s25 = sphi %s2438_s25, %s2936_s25   ;;  %s2315_s24 = sphi %s2436_s24, %s2935_s24  }
   0xd   : > { %2904 = sst [smem:[#allocation13_spill]] %s2323_s26  ;;  %s1803_s30 = sadd.s32 4294967294, %s2335_s29  }
   0xe   : > { %2905 = sst [smem:[#allocation14_spill]] %s2331_s28  ;;  %s44_s18 = sadd.s32 1, %s2331_s28 }
   0xf   : > { %2906 = sst [smem:[#allocation15_spill]] %s2335_s29  ;;  %s415_s19 = sadd.s32 1, %s2323_s26 }
  0x10   : > { %p46_p0 = scmp.ge.s32.totalorder %s44_s18, 2  ;;  %p425_p1 = scmp.ne.s32.totalorder %s2323_s26, %s2319_s25 }
  0x11   : > { %p426_p2 = scmp.eq.s32.totalorder %s1802_s0, 1  ;;  %p431_p3 = scmp.ne.s32.totalorder %s2319_s25, %s2315_s24 }
  0x12   : > { %s2938_s18 = smov (%p46_p0, %s44_s18), 0  ;;  %p432_p5 = scmp.eq.s32.totalorder %s1803_s30, 1 }
  0x13   : > { %2907 = sst [smem:[#allocation16_spill]] %s2938_s18  ;;  %p2476_p4 = por %p426_p2, %p425_p1 }
  0x14   : > { %s410_s20 = ssub.s32 %s2331_s28, %s2938_s18  ;;  %p1804_p6 = scmp.ge.s32.totalorder %s2335_s29, 1 }
  0x15   : > { %s2908_s1 = scalar_select %p2476_p4, 1, 0 }
  0x16   : > { %p413_p7 = scmp.eq.s32.totalorder %s410_s20, 0  ;;  %p2483_p8 = por %p432_p5, %p431_p3 }
  0x17   : > { %2909 = sst [smem:[#allocation17_spill]] %s2908_s1  ;;  %p439_p9 = scmp.lt.s32.totalorder %s2335_s29, 3 }
  0x18   : > { %s2910_s21 = scalar_select %p2483_p8, 1, 0 }
  0x19   : > { %s2489_s22 = scalar_select %p413_p7, %s2323_s26, %s415_s19  }
  0x1a   : > { %2911 = sst [smem:[#allocation18_spill]] %s2910_s21  ;;  %p2491_p10 = pnand %p1804_p6, %p439_p9 }
  0x1b   : > { %2912 = sst [smem:[#allocation19_spill]] %s2489_s22  ;;  %p2495_p11 = scmp.eq.s32.totalorder %s1802_s0, 0 }
  0x1c   : > { %s2913_s23 = scalar_select %p2491_p10, 1, 0 }
  0x1d   : > { %s2914_s24 = scalar_select %p2495_p11, 1, 0 }
  0x1e   : > { %p2048_p12 = pneg %p2491_p10  ;;  %s2337_s30 = smov [#allocation5]  }
  0x1f   : > { %s475_s20 = sshll.u32 %s2337_s30, 4  ;;  %s2338_s19 = smov [#allocation2]   ;;  %s476_s20 = int_to_ptr.vmem [resolvable:$true] %s475_s20 }
  0x20   : > { %p2503_p13 = pnand %p2495_p11, %p2048_p12  ;;  %s461_s28 = sshll.u32 %s2338_s19, 4  ;;  %s2507_s28 = int_to_ptr.vmem [resolvable:$true] %s461_s28 }
  0x21   : > { %s2916_s6 = sld [smem:[#allocation22_spill]] }
  0x22   : > { %p2517_p1 = pneg %p2503_p13 }
  0x27   : > { %s2165_s26 = scalar_lea.hbm %s2916_s6, 16 }
  0x28   : > { %p2166_p0 = scmp.ne.s32.totalorder %s2916_s6, %s2165_s26  ;;  %p2172_p5 = scmp.lt.u32.totalorder %s2165_s26, %s2916_s6 }
  0x2a   : > { %p2168_p2 = pnand %p2517_p1, %p2166_p0 }
  0x2c   : > { %p2169_p3 = pneg %p2168_p2 }
  0x2e   : > { %p2174_p6 = pnand %p2172_p5, %p2169_p3 }
  0x30   : > { %2177 = shalt.err (!%p2174_p6)
}
  0x31   : > { %s2178_s22 = scalar_lea.vmem %s476_s20, 16  ;;  %s2185_s29 = scalar_lea.vmem %s476_s20, 32 }
  0x32   : > { %p2179_p7 = scmp.ne.s32.totalorder %s476_s20, %s2178_s22  ;;  %p2186_p8 = scmp.lt.s32.totalorder %s476_s20, %s476_s20 }
  0x33   : > { %p2187_p4 = scmp.lt.s32.totalorder %s2185_s29, %s2178_s22 }
  0x34   : > { %p2181_p9 = pnand %p2179_p7, %p2517_p1 }
  0x35   : > { %p2188_p11 = por %p2187_p4, %p2186_p8 }
  0x36   : > { %p2182_p12 = pneg %p2181_p9 }
  0x38   : > { %p2189_p10 = pnand %p2188_p11, %p2182_p12 }
  0x3a   : > { %2192 = shalt.err (!%p2189_p10)
}
  0x3b   : > { %2054 = dma.hbm_to_vmem [thread:$0]  (!%p2503_p13), %s2916_s6, 16, %s476_s20, [#allocation6]  }
  0x3c   : > { %s2193_s19 = scalar_lea.hbm %s2870_s4, 16 }
  0x3d   : > { %p2194_p0 = scmp.ne.s32.totalorder %s2870_s4, %s2193_s19  ;;  %p2200_p8 = scmp.lt.u32.totalorder %s2193_s19, %s2870_s4 }
  0x3f   : > { %p2196_p2 = pnand %p2194_p0, %p2517_p1 }
  0x41   : > { %p2197_p4 = pneg %p2196_p2 }
  0x43   : > { %p2202_p10 = pnand %p2200_p8, %p2197_p4 }
  0x45   : > { %2205 = shalt.err (!%p2202_p10)
}
  0x46   : > { %s2206_s20 = scalar_lea.vmem %s2507_s28, 16  ;;  %s2213_s16 = scalar_lea.vmem %s2507_s28, 32 }
  0x47   : > { %p2207_p11 = scmp.ne.s32.totalorder %s2507_s28, %s2206_s20  ;;  %p2214_p6 = scmp.lt.s32.totalorder %s2507_s28, %s2507_s28 }
  0x48   : > { %p2215_p7 = scmp.lt.s32.totalorder %s2213_s16, %s2206_s20 }
  0x49   : > { %p2209_p3 = pnand %p2207_p11, %p2517_p1 }
  0x4a   : > { %p2216_p9 = por %p2215_p7, %p2214_p6 }
  0x4b   : > { %p2210_p5 = pneg %p2209_p3 }
  0x4d   : > { %p2217_p12 = pnand %p2216_p9, %p2210_p5 }
  0x4f   : > { %2220 = shalt.err (!%p2217_p12)
}
  0x50   : > { %2051 = dma.hbm_to_vmem [thread:$0]  (!%p2503_p13), %s2870_s4, 16, %s2507_s28, [#allocation3]  }
  0x51   : > { %s2339_s0 = smov [#allocation7]   ;;  %s2221_s22 = scalar_lea.hbm %s2874_s8, 16 }
  0x52   : > { %s489_s17 = sshll.u32 %s2339_s0, 4  ;;  %p2222_p0 = scmp.ne.s32.totalorder %s2874_s8, %s2221_s22  ;;  %s490_s17 = int_to_ptr.vmem [resolvable:$true] %s489_s17 }
  0x53   : > { %p2228_p8 = scmp.lt.u32.totalorder %s2221_s22, %s2874_s8 }
  0x54   : > { %p2224_p2 = pnand %p2222_p0, %p2517_p1 }
  0x56   : > { %p2225_p4 = pneg %p2224_p2 }
  0x58   : > { %p2230_p10 = pnand %p2228_p8, %p2225_p4 }
  0x5a   : > { %2233 = shalt.err (!%p2230_p10)
}
  0x5b   : > { %s2234_s28 = scalar_lea.vmem %s490_s17, 16  ;;  %s2241_s1 = scalar_lea.vmem %s490_s17, 32 }
  0x5c   : > { %p2235_p11 = scmp.ne.s32.totalorder %s490_s17, %s2234_s28  ;;  %p2242_p6 = scmp.lt.s32.totalorder %s490_s17, %s490_s17 }
  0x5d   : > { %p2243_p7 = scmp.lt.s32.totalorder %s2241_s1, %s2234_s28 }
  0x5e   : > { %p2237_p3 = pnand %p2235_p11, %p2517_p1 }
  0x5f   : > { %p2244_p9 = por %p2243_p7, %p2242_p6 }
  0x60   : > { %p2238_p5 = pneg %p2237_p3 }
  0x62   : > { %p2245_p12 = pnand %p2244_p9, %p2238_p5 }
  0x64   : > { %2248 = shalt.err (!%p2245_p12)
}
  0x65   : > { %2057 = dma.hbm_to_vmem [thread:$0]  (!%p2503_p13), %s2874_s8, 16, %s490_s17, [#allocation6]  }
  0x66   : > { %p2918_p0 = scmp.ne.s32.totalorder %s2913_s23, 0 }
  0x67   : > { %p2919_p2 = scmp.ne.s32.totalorder (!%p2918_p0), %s2914_s24, 0 }
  0x68   : > { %533 = sbr.rel (%p2918_p0) target bundleno = 3821 (0xeed), region = 88 }
  0x6f   : > { %2302 = dma.done.wait (%p2919_p2), [#allocation3], 16  }
  0x70   : > { %2304 = vsyncadd (%p2919_p2), [#allocation3], 4294967280 }
  0x71   : > { %2306 = dma.done.wait (%p2919_p2), [#allocation6], 32  }
  0x72   : > { %2308 = vsyncadd (%p2919_p2), [#allocation6], 4294967264  ;;  %p592_p1 = scmp.lt.s32.totalorder %s2327_s27, 1  ;;  %s2920_s17 = sld [smem:[#allocation20_spill]]  ;;  %vm600_vm0 = vcmask 261120   ;;  %v2125_v7 = vld [vmem:[%s2869_s3] sm:$0xff]  }
  0x73   : > { %v2340_v8 = vmov 0.0   ;;  %vm2341_vm1 = vmmov 0   ;;  %v2126_v9 = vld [vmem:[%s2869_s3 + $0x8] sm:$0xff]   ;;  %s2921_s28 = sld [smem:[#allocation21_spill]]  ;;  %v1816_v16 = vld [vmem:[%s2868_s2] ss:$0 sm:$0xff] }
  0x74   : > { %s593_s6 = scalar_select %p592_p1, %s2327_s27, 1  ;;  %1910 = vmatprep.subr.bf16.mxu1 %v2340_v8  ;;  %1914 = vmatprep.mubr.msk.bf16.mxu1 %vm2341_vm1, %v2340_v8  ;;  %v2127_v19 = vld [vmem:[%s2871_s5] sm:$0xff]   ;;  %v2128_v21 = vld [vmem:[%s2871_s5 + $0x8] sm:$0xff]   ;;  %vm825_vm2 = vcmask 64512   ;;  %vm887_vm3 = vcmask 1043456  }
  0x75   : > { %1911 = vmatpush3.bf16.msra.mxu1 %v2125_v7  ;;  %1940 = vmatprep.subr.bf16.mxu0 %v2340_v8  ;;  %v2129_v22 = vld [vmem:[%s2873_s7] sm:$0xff]   ;;  %v2130_v23 = vld [vmem:[%s2873_s7 + $0x8] sm:$0xff]   ;;  %s2342_s19 = smov 120   ;;  %s2343_s22 = smov 112  }
  0x76   : > { %s1814_s18 = sshll.u32 %s593_s6, 3  ;;  %1912 = vmatprep.subr.bf16.mxu1 %v2340_v8  ;;  %1942 = vmatprep.mubr.msk.bf16.mxu0 %vm2341_vm1, %v2340_v8  ;;  %v1821_v28 = vld [vmem:[#allocation5] ss:$0 sm:$0xff]  ;;  %v1817_v29 = vld [vmem:[#allocation2] ss:$0 sm:$0xff]  ;;  %s2344_s1 = smov 104  }
  0x77   : > { %v1825_v38 = vld [vmem:[#allocation7] ss:$0 sm:$0xff]  ;;  %s589_s21 = sand.u32 1, %s2319_s25   ;;  %s2922_s30 = sld [smem:[#allocation23_spill]] }
  0x78   : > { %s595_s26 = scalar_lea.vmem %s2920_s17, %s1814_s18  ;;  %s1813_s0 = sshll.u32 %s589_s21, 3 }
  0x79   : > { %v2590_v0 = vld [vmem:[%s595_s26] sm:$0xff]  ;;  %1913 = vmatpush3.bf16.msra.mxu1 %v2126_v9  ;;  %s2923_s23 = sld [smem:[#allocation17_spill]]  ;;  %s1862_s17 = sshll.u32 %s2327_s27, 7 }
  0x7a   : > { %v601_v1 = vsel %vm600_vm0, %v2590_v0, 0.0  ;;  %1918 = vmatprep.subr.bf16.mxu1 %v2340_v8  ;;  %v1815_v14 = vld [vmem:[%s2921_s28] ss:$0 sm:$0xff]  ;;  %s591_s26 = scalar_lea.vmem [#allocation8], %s1813_s0  ;;  %s2924_s29 = sld [smem:[#allocation24_spill]] }
  0x7b   : > { %602 = vadd.xlane.f32.xlu0 %v601_v1  ;;  %s1703_s24 = sshll.u32 %s591_s26, 4  ;;  %s1689_s27 = scalar_lea.sflag [#allocation4], %s589_s21  ;;  %s2820_s24 = int_to_ptr.vmem [resolvable:$true] %s1703_s24 }
  0x7c   : > { %s2249_s28 = scalar_lea.vmem %s2820_s24, 128 }
  0x7d   : > { %p2250_p13 = scmp.ne.s32.totalorder %s2820_s24, %s2249_s28 }
  0x7f   : > { %p2926_p4 = scmp.ne.s32.totalorder %s2923_s23, 0 }
  0x80   : > { %s2925_s20 = smov %s2924_s29  ;;  %s2818_s16 = scalar_lea.hbm %s2924_s29, %s1862_s17 }
  0x81   : > { %p2251_p8 = pnand %p2250_p13, %p2926_p4 }
  0x83   : > { %p2252_p10 = pneg %p2251_p8 }
 0x108   : > { %v603_v2 = vpop.xlane.xlu0 %602 }
 0x109   : > { %v605_v3 = vmul.f32 0.03125, %v603_v2 }
 0x10b   : > { %v606_v4 = vsub.f32 %v2590_v0, %v605_v3 }
 0x10d   : > { %v607_v5 = vmul.f32 %v606_v4, %v606_v4 }
 0x10f   : > { %v608_v6 = vsel %vm600_vm0, %v607_v5, 0.0 }
 0x110   : > { %609 = vadd.xlane.f32.xlu0 %v608_v6 }
 0x19d   : > { %v610_v10 = vpop.xlane.xlu0 %609 }
 0x19e   : > { %v611_v11 = vmul.f32 0.03125, %v610_v10 }
 0x1a0   : > { %v612_v12 = vadd.f32 1e-05, %v611_v11 }
 0x1a2   : > { %2141 = vrsqrt.f32 %v612_v12  ;;  %v1833_v12 = vld [vmem:[%s2875_s9 + $0x4] sm:$0xf] }
 0x1ac   : > { %v2142_v13 = vpop.eup %2141 }
 0x1ad   : > { %v614_v15 = vmul.f32 %v2142_v13, %v606_v4  ;;  %v1053_v13 = vsel %vm887_vm3, %v1833_v12, 0 }
 0x1af   : > { %v621_v17 = vmul.f32 %v1815_v14, %v614_v15 }
 0x1b1   : > { %v628_v18 = vadd.f32 %v1816_v16, %v621_v17 }
 0x1b3   : > { %v629_v20 = vpack.c.bf16 %v628_v18, %v628_v18  ;;  %v932_v18 = vld [vmem:[%s2875_s9] sm:$0xf] }
 0x1b5   : > { %1915 = vmatmul.mubr.msk.bf16.vlgmr.msra.gmra.mrb[0].mxu1 %vm600_vm0, %v629_v20 }
 0x1b6   : > { %1919 = vmatpush3.bf16.msra.mxu1 %v2127_v19  ;;  %1922 = vmatprep.mubr.msk.bf16.mxu1 %vm2341_vm1, %v2340_v8 }
 0x1b7   : > { %1920 = vmatprep.subr.bf16.mxu1 %v2340_v8 }
 0x1ba   : > { %1921 = vmatpush3.bf16.msra.mxu1 %v2128_v21  ;;  %v1099_v21 = vsel %vm887_vm3, %v932_v18, 0 }
 0x1bb   : > { %1926 = vmatprep.subr.bf16.mxu1 %v2340_v8 }
 0x1bd   : > { %1923 = vmatmul.mubr.msk.bf16.vlgmr.msra.gmra.mrb[4].mxu1 %vm600_vm0, %v629_v20 }
 0x1be   : > { %1927 = vmatpush3.bf16.msra.mxu1 %v2129_v22  ;;  %1930 = vmatprep.mubr.msk.bf16.mxu1 %vm2341_vm1, %v2340_v8 }
 0x1bf   : > { %1928 = vmatprep.subr.bf16.mxu1 %v2340_v8 }
 0x1c2   : > { %1929 = vmatpush3.bf16.msra.mxu1 %v2130_v23 }
 0x1c3   : > { %1934 = vmatprep.subr.bf16.mxu1 %v2340_v8 }
 0x1c5   : > { %1931 = vmatmul.mubr.msk.bf16.vlgmr.msra.gmra.mrb[8].mxu1 %vm600_vm0, %v629_v20 }
 0x1c6   : > { %1936 = vmatprep.mubr.msk.bf16.mxu1 %vm2341_vm1, %v2340_v8 }
 0x288   : > { %v690_v24 = vpop.f32.mrb[0].mxu1 }
 0x289   : > { %v1916_v25 = vpop.f32.mrb[1].mxu1  ;;  %v691_v34 = vadd.f32 %v1817_v29, %v690_v24 }
 0x28a   : > { %v693_v26 = vpop.f32.mrb[2].mxu1 }
 0x28b   : > { %v1917_v27 = vpop.f32.mrb[3].mxu1  ;;  %v2647_v39 = vpack.c.bf16 %v691_v34, %v691_v34 }
 0x290   : > { %v754_v30 = vpop.f32.mrb[4].mxu1 }
 0x291   : > { %v755_v31 = vadd.f32 %v1821_v28, %v754_v30  ;;  %v1924_v32 = vpop.f32.mrb[5].mxu1 }
 0x292   : > { %v757_v33 = vpop.f32.mrb[6].mxu1 }
 0x293   : > { %v2641_v35 = vpack.c.bf16 %v755_v31, %v755_v31  ;;  %v1925_v36 = vpop.f32.mrb[7].mxu1 }
 0x295   : > { %937 = vrot.lane.b32.xlu1 %v2641_v35, %s2342_s19  ;;  %v830_v37 = vsel %vm825_vm2, %v2641_v35, 0 }
 0x296   : > { %1935 = vmatpush3.bf16.xpose.msra.mxu1 %v830_v37 }
 0x297   : > { %1946 = vmatprep.subr.bf16.mxu1 %v2340_v8 }
 0x298   : > { %v818_v40 = vpop.f32.mrb[8].mxu1 }
 0x299   : > { %v819_v41 = vadd.f32 %v1825_v38, %v818_v40  ;;  %934 = vrot.lane.b32.xlu1 %v2647_v39, %s2342_s19  ;;  %v1932_v42 = vpop.f32.mrb[9].mxu1 }
 0x29a   : > { %v821_v43 = vpop.f32.mrb[10].mxu1 }
 0x29b   : > { %v2652_v44 = vpack.c.bf16 %v819_v41, %v819_v41  ;;  %v1933_v45 = vpop.f32.mrb[11].mxu1 }
 0x29d   : > { %1937 = vmatmul.mubr.msk.bf16.vlgmr.msra.gmra.mrb[12].mxu1 %vm825_vm2, %v2647_v39  ;;  %v889_v46 = vsel %vm887_vm3, %v2652_v44, 0 }
 0x29e   : > { %1941 = vmatpush3.bf16.msra.mxu0 %v889_v46  ;;  %1948 = vmatprep.mubr.msk.bf16.mxu1 %vm2341_vm1, %v2340_v8 }
 0x29f   : > { %1952 = vmatprep.subr.bf16.mxu0 %v2340_v8 }
 0x307   : > { %v938_v47 = vpop.permute.xlu1 %937 }
 0x308   : > { %v943_v48 = vsel %vm825_vm2, %v938_v47, 0 }
 0x309   : > { %1947 = vmatpush3.bf16.xpose.msra.mxu1 %v943_v48 }
 0x30a   : > { %1958 = vmatprep.subr.bf16.mxu1 %v2340_v8 }
 0x30b   : > { %v935_v49 = vpop.permute.xlu1 %934 }
 0x310   : > { %1949 = vmatmul.mubr.msk.bf16.vlgmr.msra.gmra.mrb[16].mxu1 %vm825_vm2, %v935_v49 }
 0x311   : > { %1960 = vmatprep.mubr.msk.bf16.mxu1 %vm2341_vm1, %v2340_v8  ;;  %1959 = vmatpush3.bf16.msra.mxu1 %v1053_v13 }
 0x312   : > { %1970 = vmatprep.subr.bf16.mxu1 %v2340_v8 }
 0x370   : > { %v866_v50 = vpop.f32.mrb[12].mxu1 }
 0x371   : > { %v1938_v51 = vpop.f32.mrb[13].mxu1  ;;  %v872_v52 = vsel %vm825_vm2, %v866_v50, -inf }
 0x372   : > { %873 = vmax.xlane.f32.xlu0 %v872_v52  ;;  %v869_v53 = vpop.f32.mrb[14].mxu1 }
 0x373   : > { %v1939_v54 = vpop.f32.mrb[15].mxu1 }
 0x3e3   : > { %v979_v55 = vpop.f32.mrb[16].mxu1 }
 0x3e4   : > { %v1950_v56 = vpop.f32.mrb[17].mxu1  ;;  %v985_v57 = vsel %vm825_vm2, %v979_v55, -inf }
 0x3e5   : > { %986 = vmax.xlane.f32.xlu1 %v985_v57  ;;  %v982_v58 = vpop.f32.mrb[18].mxu1 }
 0x3e6   : > { %v1951_v59 = vpop.f32.mrb[19].mxu1 }
 0x3f6   : > { %1141 = vrot.lane.b32.xlu1 %v2647_v39, %s2343_s22 }
 0x3ff   : > { %v874_v60 = vpop.xlane.xlu0 %873 }
 0x400   : > { %v875_v61 = vsub.f32 %v866_v50, %v874_v60 }
 0x402   : > { %v876_v62 = vmul.f32 1.442695, %v875_v61 }
 0x404   : > { %2143 = vpow2.f32 %v876_v62 }
 0x40e   : > { %v2144_v63 = vpop.eup %2143 }
 0x40f   : > { %v878_v1 = vsel %vm825_vm2, %v2144_v63, 0.0 }
 0x410   : > { %879 = vadd.xlane.f32.xlu0 %v878_v1 }
 0x472   : > { %v987_v2 = vpop.xlane.xlu1 %986 }
 0x473   : > { %v988_v3 = vsub.f32 %v979_v55, %v987_v2 }
 0x475   : > { %v989_v4 = vmul.f32 1.442695, %v988_v3 }
 0x476   : > { %v1142_v34 = vpop.permute.xlu1 %1141 }
 0x477   : > { %2145 = vpow2.f32 %v989_v4 }
 0x481   : > { %v2146_v5 = vpop.eup %2145 }
 0x482   : > { %v991_v6 = vsel %vm825_vm2, %v2146_v5, 0.0 }
 0x483   : > { %992 = vadd.xlane.f32.xlu0 %v991_v6 }
 0x499   : > { %998 = vrot.lane.b32.xlu0 %v2652_v44, %s2342_s19 }
 0x49d   : > { %v880_v7 = vpop.xlane.xlu0 %879  ;;  %1143 = vrot.lane.b32.xlu0 %v2641_v35, %s2343_s22 }
 0x49e   : > { %2147 = vrcp.f32 %v880_v7 }
 0x4a8   : > { %v2148_v9 = vpop.eup %2147 }
 0x4a9   : > { %v882_v10 = vmul.f32 %v2148_v9, %v2144_v63 }
 0x4ab   : > { %v883_v11 = vpack.c.bf16 %v882_v10, %v882_v10 }
 0x4ad   : > { %1943 = vmatmul.mubr.msk.bf16.vlgmr.msra.gmra.mrb[0].mxu0 %vm825_vm2, %v883_v11 }
 0x4ae   : > { %1954 = vmatprep.mubr.msk.bf16.mxu0 %vm2341_vm1, %v2340_v8 }
 0x510   : > { %v993_v14 = vpop.xlane.xlu0 %992 }
 0x511   : > { %2149 = vrcp.f32 %v993_v14 }
 0x514   : > { %v999_v15 = vpop.permute.xlu0 %998 }
 0x515   : > { %v1004_v16 = vsel %vm887_vm3, %v999_v15, 0 }
 0x516   : > { %1953 = vmatpush3.bf16.msra.mxu0 %v1004_v16 }
 0x517   : > { %1964 = vmatprep.subr.bf16.mxu0 %v2340_v8 }
 0x518   : > { %v1144_v27 = vpop.permute.xlu0 %1143 }
 0x519   : > { %v1149_v32 = vsel %vm825_vm2, %v1144_v27, 0 }
 0x51b   : > { %v2150_v17 = vpop.eup %2149 }
 0x51c   : > { %v995_v19 = vmul.f32 %v2150_v17, %v2146_v5 }
 0x51e   : > { %v996_v20 = vpack.c.bf16 %v995_v19, %v995_v19 }
 0x520   : > { %1955 = vmatmul.mubr.msk.bf16.vlgmr.msra.gmra.mrb[4].mxu0 %vm825_vm2, %v996_v20 }
 0x521   : > { %1965 = vmatpush3.bf16.msra.mxu0 %v1099_v21  ;;  %1966 = vmatprep.mubr.msk.bf16.mxu0 %vm2341_vm1, %v2340_v8  ;;  %v1842_v21 = vld [vmem:[%s2875_s9 + $0xc] sm:$0xf] }
 0x522   : > { %1976 = vmatprep.subr.bf16.mxu0 %v2340_v8 }
 0x580   : > { %v925_v22 = vpop.f32.mrb[0].mxu0 }
 0x581   : > { %v931_v23 = vpack.c.bf16 %v925_v22, %v925_v22  ;;  %v1944_v24 = vpop.f32.mrb[1].mxu0 }
 0x582   : > { %v928_v25 = vpop.f32.mrb[2].mxu0 }
 0x583   : > { %v1945_v26 = vpop.f32.mrb[3].mxu0  ;;  %1967 = vmatmul.mubr.msk.bf16.vlgmr.msra.gmra.mrb[8].mxu0 %vm825_vm2, %v931_v23 }
 0x584   : > { %1978 = vmatprep.mubr.msk.bf16.mxu0 %vm2341_vm1, %v2340_v8 }
 0x5f3   : > { %v1040_v28 = vpop.f32.mrb[4].mxu0 }
 0x5f4   : > { %v1046_v29 = vpack.c.bf16 %v1040_v28, %v1040_v28  ;;  %v1956_v30 = vpop.f32.mrb[5].mxu0 }
 0x5f5   : > { %v1043_v31 = vpop.f32.mrb[6].mxu0 }
 0x5f6   : > { %v1957_v33 = vpop.f32.mrb[7].mxu0  ;;  %1961 = vmatmul.mubr.msk.bf16.vlgmr.msra.gmra.mrb[20].mxu1 %vm825_vm2, %v1046_v29 }
 0x5f7   : > { %1971 = vmatpush3.bf16.xpose.msra.mxu1 %v1149_v32  ;;  %1972 = vmatprep.mubr.msk.bf16.mxu1 %vm2341_vm1, %v2340_v8 }
 0x5f8   : > { %1982 = vmatprep.subr.bf16.mxu1 %v2340_v8 }
 0x5fe   : > { %1973 = vmatmul.mubr.msk.bf16.vlgmr.msra.gmra.mrb[24].mxu1 %vm825_vm2, %v1142_v34 }
 0x5ff   : > { %1984 = vmatprep.mubr.msk.bf16.mxu1 %vm2341_vm1, %v2340_v8 }
 0x656   : > { %v1135_v36 = vpop.f32.mrb[8].mxu0 }
 0x657   : > { %v1968_v37 = vpop.f32.mrb[9].mxu0 }
 0x658   : > { %v1138_v38 = vpop.f32.mrb[10].mxu0 }
 0x659   : > { %v1969_v40 = vpop.f32.mrb[11].mxu0 }
 0x6c9   : > { %v1089_v41 = vpop.f32.mrb[20].mxu1 }
 0x6ca   : > { %v2705_v42 = vadd.f32 %v1135_v36, %v1089_v41  ;;  %v1962_v43 = vpop.f32.mrb[21].mxu1  ;;  %v1844_v41 = vld [vmem:[%s2876_s10] ss:$0 sm:$0xff] }
 0x6cb   : > { %v1092_v45 = vpop.f32.mrb[22].mxu1 }
 0x6cc   : > { %v1963_v46 = vpop.f32.mrb[23].mxu1 }
 0x6d1   : > { %v1185_v47 = vpop.f32.mrb[24].mxu1 }
 0x6d2   : > { %v1974_v48 = vpop.f32.mrb[25].mxu1  ;;  %v1191_v49 = vsel %vm825_vm2, %v1185_v47, -inf }
 0x6d3   : > { %1192 = vmax.xlane.f32.xlu0 %v1191_v49  ;;  %v1188_v50 = vpop.f32.mrb[26].mxu1 }
 0x6d4   : > { %v1975_v51 = vpop.f32.mrb[27].mxu1 }
 0x6e9   : > { %1203 = vrot.lane.b32.xlu0 %v2652_v44, %s2343_s22 }
 0x6ed   : > { %1301 = vrot.lane.b32.xlu0 %v2647_v39, %s2344_s1 }
 0x760   : > { %v1193_v52 = vpop.xlane.xlu0 %1192 }
 0x761   : > { %v1194_v53 = vsub.f32 %v1185_v47, %v1193_v52 }
 0x763   : > { %v1195_v54 = vmul.f32 1.442695, %v1194_v53  ;;  %v2131_v53 = vld [vmem:[%s2879_s13] sm:$0xff]  }
 0x764   : > { %v1204_v55 = vpop.permute.xlu0 %1203 }
 0x765   : > { %2151 = vpow2.f32 %v1195_v54  ;;  %v1209_v56 = vsel %vm887_vm3, %v1204_v55, 0 }
 0x766   : > { %1977 = vmatpush3.bf16.msra.mxu0 %v1209_v56 }
 0x767   : > { %1988 = vmatprep.subr.bf16.mxu0 %v2340_v8 }
 0x768   : > { %v1302_v1 = vpop.permute.xlu0 %1301 }
 0x76f   : > { %v2152_v57 = vpop.eup %2151 }
 0x770   : > { %v1197_v58 = vsel %vm825_vm2, %v2152_v57, 0.0 }
 0x771   : > { %1198 = vadd.xlane.f32.xlu1 %v1197_v58  ;;  %v1845_v58 = vld [vmem:[%s2877_s11] ss:$0 sm:$0xff] }
 0x782   : > { %1303 = vrot.lane.b32.xlu1 %v2641_v35, %s2344_s1  ;;  %v1838_v35 = vld [vmem:[%s2875_s9 + $0x8] sm:$0xf] }
 0x783   : > { %v1258_v2 = vsel %vm887_vm3, %v1838_v35, 0  ;;  %v2135_v35 = vld [vmem:[%s2881_s15 + $0x10] sm:$0xff]  }
 0x784   : > { %1983 = vmatpush3.bf16.msra.mxu1 %v1258_v2  ;;  %v2136_v2 = vld [vmem:[%s2881_s15 + $0x18] sm:$0xff]  }
 0x785   : > { %1994 = vmatprep.subr.bf16.mxu1 %v2340_v8 }
 0x7fe   : > { %v1199_v59 = vpop.xlane.xlu1 %1198 }
 0x7ff   : > { %2153 = vrcp.f32 %v1199_v59 }
 0x802   : > { %v1304_v61 = vpop.permute.xlu1 %1303 }
 0x803   : > { %v1309_v63 = vsel %vm825_vm2, %v1304_v61, 0 }
 0x809   : > { %v2154_v39 = vpop.eup %2153 }
 0x80a   : > { %v1201_v60 = vmul.f32 %v2154_v39, %v2152_v57  ;;  %v1846_v39 = vld [vmem:[%s2878_s12] ss:$0 sm:$0xff] }
 0x80c   : > { %v1202_v62 = vpack.c.bf16 %v1201_v60, %v1201_v60 }
 0x80e   : > { %1979 = vmatmul.mubr.msk.bf16.vlgmr.msra.gmra.mrb[12].mxu0 %vm825_vm2, %v1202_v62 }
 0x80f   : > { %1989 = vmatpush3.bf16.xpose.msra.mxu0 %v1309_v63  ;;  %1990 = vmatprep.mubr.msk.bf16.mxu0 %vm2341_vm1, %v2340_v8  ;;  %v2133_v63 = vld [vmem:[%s2881_s15] sm:$0xff]  }
 0x810   : > { %2000 = vmatprep.subr.bf16.mxu0 %v2340_v8 }
 0x816   : > { %1991 = vmatmul.mubr.msk.bf16.vlgmr.msra.gmra.mrb[16].mxu0 %vm825_vm2, %v1302_v1  ;;  %v2134_v1 = vld [vmem:[%s2881_s15 + $0x8] sm:$0xff]  }
 0x817   : > { %2002 = vmatprep.mubr.msk.bf16.mxu0 %vm2341_vm1, %v2340_v8 }
 0x8e1   : > { %v1245_v3 = vpop.f32.mrb[12].mxu0 }
 0x8e2   : > { %v1251_v4 = vpack.c.bf16 %v1245_v3, %v1245_v3  ;;  %v1980_v5 = vpop.f32.mrb[13].mxu0  ;;  %v2137_v3 = vld [vmem:[%s2881_s15 + $0x20] sm:$0xff]  }
 0x8e3   : > { %v1248_v6 = vpop.f32.mrb[14].mxu0  ;;  %v2139_v5 = vld [vmem:[%s2881_s15 + $0x30] sm:$0xff]  }
 0x8e4   : > { %v1981_v7 = vpop.f32.mrb[15].mxu0  ;;  %1985 = vmatmul.mubr.msk.bf16.vlgmr.msra.gmra.mrb[28].mxu1 %vm825_vm2, %v1251_v4  ;;  %v2138_v4 = vld [vmem:[%s2881_s15 + $0x28] sm:$0xff]   ;;  %v2140_v6 = vld [vmem:[%s2881_s15 + $0x38] sm:$0xff]  }
 0x8e5   : > { %1996 = vmatprep.mubr.msk.bf16.mxu1 %vm2341_vm1, %v2340_v8  ;;  %v1847_v7 = vld [vmem:[%s2880_s14] ss:$0 sm:$0xff] }
 0x8e9   : > { %v1345_v9 = vpop.f32.mrb[16].mxu0 }
 0x8ea   : > { %v1992_v10 = vpop.f32.mrb[17].mxu0  ;;  %v1351_v11 = vsel %vm825_vm2, %v1345_v9, -inf }
 0x8eb   : > { %1352 = vmax.xlane.f32.xlu0 %v1351_v11  ;;  %v1348_v12 = vpop.f32.mrb[18].mxu0 }
 0x8ec   : > { %v1993_v13 = vpop.f32.mrb[19].mxu0 }
 0x901   : > { %1363 = vrot.lane.b32.xlu0 %v2652_v44, %s2344_s1  ;;  %v1418_v44 = vsel %vm887_vm3, %v1842_v21, 0  ;;  %s2345_s1 = smov [#allocation8]  }
 0x902   : > { %2001 = vmatpush3.bf16.msra.mxu0 %v1418_v44  ;;  %s2253_s0 = sshll.u32 %s2345_s1, 4  ;;  %s2254_s0 = int_to_ptr.vmem [resolvable:$false] %s2253_s0 }
 0x903   : > { %2014 = vmatprep.subr.bf16.mxu0 %v2340_v8  ;;  %s2255_s6 = scalar_lea.vmem %s2254_s0, 256  ;;  %p2256_p11 = scmp.lt.s32.totalorder %s2820_s24, %s2254_s0 }
 0x904   : > { %p2257_p3 = scmp.lt.s32.totalorder %s2255_s6, %s2249_s28 }
 0x906   : > { %p2258_p5 = por %p2257_p3, %p2256_p11 }
 0x908   : > { %p2259_p6 = pnand %p2258_p5, %p2252_p10 }
 0x978   : > { %v1353_v14 = vpop.xlane.xlu0 %1352 }
 0x979   : > { %v1354_v15 = vsub.f32 %v1345_v9, %v1353_v14 }
 0x97b   : > { %v1355_v16 = vmul.f32 1.442695, %v1354_v15 }
 0x97c   : > { %v1364_v17 = vpop.permute.xlu0 %1363 }
 0x97d   : > { %2155 = vpow2.f32 %v1355_v16  ;;  %v1369_v18 = vsel %vm887_vm3, %v1364_v17, 0 }
 0x97e   : > { %1995 = vmatpush3.bf16.msra.mxu1 %v1369_v18 }
 0x97f   : > { %2006 = vmatprep.subr.bf16.mxu1 %v2340_v8 }
 0x987   : > { %v2156_v19 = vpop.eup %2155 }
 0x988   : > { %v1357_v20 = vsel %vm825_vm2, %v2156_v19, 0.0 }
 0x989   : > { %1358 = vadd.xlane.f32.xlu1 %v1357_v20  ;;  %v1852_v20 = vld [vmem:[%s2922_s30] ss:$0 sm:$0xff] }
 0x9b7   : > { %v1294_v22 = vpop.f32.mrb[28].mxu1 }
 0x9b8   : > { %v1300_v23 = vadd.f32 %v1294_v22, %v2705_v42  ;;  %v1986_v24 = vpop.f32.mrb[29].mxu1 }
 0x9b9   : > { %v1297_v25 = vpop.f32.mrb[30].mxu1 }
 0x9ba   : > { %v1987_v26 = vpop.f32.mrb[31].mxu1 }
 0xa16   : > { %v1359_v27 = vpop.xlane.xlu1 %1358 }
 0xa17   : > { %2157 = vrcp.f32 %v1359_v27 }
 0xa21   : > { %v2158_v28 = vpop.eup %2157 }
 0xa22   : > { %v1361_v29 = vmul.f32 %v2158_v28, %v2156_v19 }
 0xa24   : > { %v1362_v30 = vpack.c.bf16 %v1361_v29, %v1361_v29 }
 0xa26   : > { %1997 = vmatmul.mubr.msk.bf16.vlgmr.msra.gmra.mrb[32].mxu1 %vm825_vm2, %v1362_v30 }
 0xa27   : > { %2010 = vmatprep.mubr.msk.bf16.mxu1 %vm2341_vm1, %v2340_v8  ;;  %2007 = vmatpush3.bf16.msra.mxu1 %v2131_v53 }
 0xa28   : > { %2008 = vmatprep.subr.bf16.mxu1 %v2340_v8 }
 0xaf9   : > { %v1405_v31 = vpop.f32.mrb[32].mxu1 }
 0xafa   : > { %v1411_v32 = vpack.c.bf16 %v1405_v31, %v1405_v31  ;;  %v1998_v33 = vpop.f32.mrb[33].mxu1 }
 0xafb   : > { %v1408_v34 = vpop.f32.mrb[34].mxu1 }
 0xafc   : > { %v1999_v36 = vpop.f32.mrb[35].mxu1  ;;  %2003 = vmatmul.mubr.msk.bf16.vlgmr.msra.gmra.mrb[20].mxu0 %vm825_vm2, %v1411_v32 }
 0xafd   : > { %2030 = vmatprep.mubr.msk.bf16.mxu0 %vm2341_vm1, %v2340_v8  ;;  %2015 = vmatpush3.bf16.msra.mxu0 %v2133_v63 }
 0xafe   : > { %2016 = vmatprep.subr.bf16.mxu0 %v2340_v8 }
 0xb01   : > { %2017 = vmatpush3.bf16.msra.mxu0 %v2134_v1 }
 0xb02   : > { %2018 = vmatprep.subr.bf16.mxu0 %v2340_v8 }
 0xb05   : > { %2019 = vmatpush3.bf16.msra.mxu0 %v2135_v35 }
 0xb06   : > { %2020 = vmatprep.subr.bf16.mxu0 %v2340_v8 }
 0xb09   : > { %2021 = vmatpush3.bf16.msra.mxu0 %v2136_v2 }
 0xb0a   : > { %2022 = vmatprep.subr.bf16.mxu0 %v2340_v8 }
 0xb0d   : > { %2023 = vmatpush3.bf16.msra.mxu0 %v2137_v3 }
 0xb0e   : > { %2024 = vmatprep.subr.bf16.mxu0 %v2340_v8 }
 0xb11   : > { %2025 = vmatpush3.bf16.msra.mxu0 %v2138_v4 }
 0xb12   : > { %2026 = vmatprep.subr.bf16.mxu0 %v2340_v8 }
 0xb15   : > { %2027 = vmatpush3.bf16.msra.mxu0 %v2139_v5 }
 0xb16   : > { %2028 = vmatprep.subr.bf16.mxu0 %v2340_v8 }
 0xb19   : > { %2029 = vmatpush3.bf16.msra.mxu0 %v2140_v6 }
 0xbcf   : > { %v1454_v37 = vpop.f32.mrb[20].mxu0 }
 0xbd0   : > { %v1460_v38 = vadd.f32 %v1454_v37, %v1300_v23  ;;  %v2004_v40 = vpop.f32.mrb[21].mxu0 }
 0xbd1   : > { %v1457_v42 = vpop.f32.mrb[22].mxu0 }
 0xbd2   : > { %v1461_v43 = vadd.f32 %v1460_v38, %v2590_v0  ;;  %v2005_v45 = vpop.f32.mrb[23].mxu0  ;;  %v2132_v0 = vld [vmem:[%s2879_s13 + $0x8] sm:$0xff]  }
 0xbd3   : > { %2009 = vmatpush3.bf16.msra.mxu1 %v2132_v0 }
 0xbd4   : > { %v2755_v46 = vadd.f32 %v1844_v41, %v1461_v43 }
 0xbd6   : > { %v1472_v47 = vsel %vm600_vm0, %v2755_v46, 0.0 }
 0xbd7   : > { %1473 = vadd.xlane.f32.xlu1 %v1472_v47 }
 0xc64   : > { %v1474_v48 = vpop.xlane.xlu1 %1473 }
 0xc65   : > { %v1475_v49 = vmul.f32 0.03125, %v1474_v48 }
 0xc67   : > { %v1476_v50 = vsub.f32 %v2755_v46, %v1475_v49 }
 0xc69   : > { %v1477_v51 = vmul.f32 %v1476_v50, %v1476_v50 }
 0xc6b   : > { %v1478_v52 = vsel %vm600_vm0, %v1477_v51, 0.0 }
 0xc6c   : > { %1479 = vadd.xlane.f32.xlu1 %v1478_v52 }
 0xcf9   : > { %v1480_v54 = vpop.xlane.xlu1 %1479 }
 0xcfa   : > { %v1481_v55 = vmul.f32 0.03125, %v1480_v54 }
 0xcfc   : > { %v1482_v56 = vadd.f32 1e-05, %v1481_v55 }
 0xcfe   : > { %2159 = vrsqrt.f32 %v1482_v56 }
 0xd08   : > { %v2160_v57 = vpop.eup %2159 }
 0xd09   : > { %v1484_v59 = vmul.f32 %v2160_v57, %v1476_v50 }
 0xd0b   : > { %v1491_v60 = vmul.f32 %v1845_v58, %v1484_v59 }
 0xd0d   : > { %v1498_v61 = vadd.f32 %v1846_v39, %v1491_v60 }
 0xd0f   : > { %v1499_v62 = vpack.c.bf16 %v1498_v61, %v1498_v61 }
 0xd11   : > { %2011 = vmatmul.mubr.msk.bf16.vlgmr.msra.gmra.mrb[36].mxu1 %vm600_vm0, %v1499_v62 }
 0xde4   : > { %v1560_v9 = vpop.f32.mrb[36].mxu1 }
 0xde5   : > { %v1561_v10 = vadd.f32 %v1847_v7, %v1560_v9  ;;  %v2012_v11 = vpop.f32.mrb[37].mxu1 }
 0xde6   : > { %v1563_v12 = vpop.f32.mrb[38].mxu1 }
 0xde7   : > { %v1851_v13 = vmul.f32 -1.702, %v1561_v10  ;;  %v2013_v14 = vpop.f32.mrb[39].mxu1 }
 0xde9   : > { %v1568_v15 = vmul.f32 1.442695, %v1851_v13 }
 0xdeb   : > { %2161 = vpow2.f32 %v1568_v15 }
 0xdf5   : > { %v2162_v8 = vpop.eup %2161 }
 0xdf6   : > { %v1570_v16 = vadd.f32 1.0, %v2162_v8 }
 0xdf8   : > { %2163 = vrcp.f32 %v1570_v16 }
 0xe02   : > { %v2164_v17 = vpop.eup %2163 }
 0xe03   : > { %v1573_v18 = vmul.f32 %v2164_v17, %v1561_v10 }
 0xe05   : > { %v1574_v19 = vpack.c.bf16 %v1573_v18, %v1573_v18 }
 0xe07   : > { %2031 = vmatmul.mubr.bf16.vlgmr.msra.gmra.mrb[24].mxu0 %v1574_v19 }
 0xeda   : > { %v1680_v21 = vpop.f32.mrb[24].mxu0 }
 0xedb   : > { %v1681_v44 = vadd.f32 %v1852_v20, %v1680_v21  ;;  %v2032_v22 = vpop.f32.mrb[25].mxu0 }
 0xedc   : > { %v1683_v23 = vpop.f32.mrb[26].mxu0 }
 0xedd   : > { %v1686_v24 = vadd.f32 %v1681_v44, %v2755_v46  ;;  %v2033_v25 = vpop.f32.mrb[27].mxu0 }
 0xedf   : > { %1687 = vst.msk [vmem:[%s591_s26] sm:$0xff] %vm600_vm0, %v1686_v24 }
 0xee0   : > { %2262 = shalt.err (!%p2259_p6)
}
 0xee1   : > { %s2263_s21 = scalar_lea.hbm %s2818_s16, 128  ;;  %s2267_s17 = scalar_lea.hbm %s2925_s20, 256 }
 0xee2   : > { %p2264_p7 = scmp.ne.s32.totalorder %s2818_s16, %s2263_s21  ;;  %p2268_p0 = scmp.lt.u32.totalorder %s2818_s16, %s2925_s20 }
 0xee3   : > { %p2269_p2 = scmp.lt.u32.totalorder %s2267_s17, %s2263_s21  ;;  %p2271_p13 = scmp.lt.u32.totalorder %s2263_s21, %s2818_s16 }
 0xee4   : > { %p2265_p9 = pnand %p2264_p7, %p2926_p4 }
 0xee5   : > { %p2270_p1 = por %p2269_p2, %p2268_p0 }
 0xee6   : > { %p2266_p12 = pneg %p2265_p9 }
 0xee7   : > { %p2272_p8 = por %p2271_p13, %p2270_p1 }
 0xee9   : > { %p2273_p10 = pnand %p2272_p8, %p2266_p12 }
 0xeeb   : > { %2276 = shalt.err (!%p2273_p10)
}
 0xeec   : > { %2046 = dma.vmem_to_hbm [thread:$0]  (%p2926_p4), %s2820_s24, 128, %s2818_s16, %s1689_s27  }
 0xeed PF: > { %s2927_s22 = sld [smem:[#allocation15_spill]]  ;;  %s2928_s29 = sld [smem:[#allocation12_spill]] }
 0xeee   : > { %s2929_s28 = sld [smem:[#allocation18_spill]] }
 0xef3   : > { %p2068_p11 = scmp.ge.s32.totalorder %s2927_s22, 2  ;;  %s1715_s1 = sand.u32 1, %s2928_s29  }
 0xef4   : > { %p2930_p3 = scmp.ne.s32.totalorder %s2929_s28, 0  ;;  %s1716_s0 = scalar_lea.sflag [#allocation4], %s1715_s1 }
 0xef6   : > { %p2059_p5 = pnand %p2068_p11, %p2930_p3 }
 0xef8   : > { %2310 = dma.done.wait (!%p2059_p5), %s1716_s0, 128  }
 0xef9   : > { %2312 = vsyncadd (!%p2059_p5), %s1716_s0, 4294967168  ;;  %s32_s29 = sadd.s32 1, %s2927_s22   ;;  %s2931_s6 = sld [smem:[#allocation13_spill]] }
 0xefa   : > { %p29_p6 = scmp.ge.s32.totalorder %s32_s29, 4   ;;  %s2932_s26 = sld [smem:[#allocation19_spill]] }
 0xefb   : > { %s2933_s27 = sld [smem:[#allocation14_spill]]  ;;  %s2934_s28 = sld [smem:[#allocation16_spill]] }
 0xefc   : > { %s2935_s24 = smov %s2319_s25  ;;  %31 = sbr.rel (!%p29_p6) target bundleno = 12 (0xc), region = 139 }
 0xeff   : > { %s2936_s25 = smov %s2931_s6 }
 0xf03   :  { %1721 = vsyncpa [#allocation3], 1 }
 0xf04   :  { %1723 = vsyncpa [#allocation3 + $0x1], 1 }
 0xf05   :  { %1724 = vsyncpa [#allocation6], 1 }
 0xf06   :  { %1725 = vsyncpa [#allocation4], 1 }
 0xf07   :  { %1727 = vsyncpa [#allocation4 + $0x1], 1 }

</bundles_post_ra>
